<compile_context>
chip_gen: v7x
topology: tpu7x:2x2x1
jax: 0.10.0
libtpu: 0.0.40
codegen_flags: <defaults>
</compile_context>

<pallas_src>
import functools

import jax
import jax.numpy as jnp
import numpy as np
from jax import lax
from jax.experimental import pallas as pl
from jax.experimental.pallas import tpu as pltpu


# -----------------------------------------------------------------------------
# Pallas kernel: Bb batch elements per grid step (post-BERT hot path)
# -----------------------------------------------------------------------------
def _intergcn_kernel(aux_ref, text_ref, adj_ref, dadj_ref,
                     w1_ref, b1_ref, w2_ref, b2_ref,
                     w3_ref, b3_ref, w4_ref, b4_ref,
                     pooled_ref, *, act_dtype):
    text = text_ref[...]                        # [Bb, S, D] f32
    Bb, S, D = text.shape

    # Rebuild position weights / aspect mask from per-batch scalars.
    # aux = (a0, a1, text_len, 1/context_len), shape [Bb, 1, 4] f32.
    aux = aux_ref[...]
    a0 = aux[:, :, 0:1]                         # [Bb, 1, 1]
    a1 = aux[:, :, 1:2]
    tl = aux[:, :, 2:3]
    inv_ctx = aux[:, :, 3:4]
    j = lax.broadcasted_iota(jnp.int32, (Bb, S, 1), 1).astype(jnp.float32)
    w_left = 1.0 - (a0 - j) * inv_ctx
    w_right = 1.0 - (j - a1) * inv_ctx
    pw = jnp.where(j < a0, w_left,
                   jnp.where(j <= a1, 0.0,
                             jnp.where(j < tl, w_right, 0.0)))      # [Bb, S, 1]
    msk = jnp.logical_and(j >= a0, j <= a1).astype(jnp.float32)     # [Bb, S, 1]

    adj_n = adj_ref[...]                        # [Bb, S, S] bf16 (pre-normalized)
    dadj_n = dadj_ref[...]

    def gcn_relu(x_in, w_ref, b_ref, a_n):
        # Position-weight (f32 VPU), then the big D x D matmul for the whole
        # batch block at once (M = Bb*S fills the MXU), bf16 in / f32 acc.
        xw = jnp.dot(
            (pw * x_in.astype(jnp.float32)).reshape(Bb * S, D).astype(jnp.bfloat16),
            w_ref[...],
            preferred_element_type=jnp.float32).reshape(Bb, S, D)
        out = jnp.einsum('bij,bjd->bid', a_n, xw.astype(jnp.bfloat16),
                         preferred_element_type=jnp.float32) + b_ref[...]
        # Inter-layer activations carried in act_dtype (bf16 on v6e/v7x).
        return jnp.maximum(out, 0.0).astype(act_dtype)

    # x   = relu(gc1(pw*text, adj));   x   = relu(gc2(pw*x, adj))
    # x_d = relu(gc3(pw*x, d_adj));    x_d = relu(gc4(pw*x_d, d_adj))
    x = gcn_relu(text, w1_ref, b1_ref, adj_n)
    x = gcn_relu(x, w2_ref, b2_ref, adj_n)
    xd = gcn_relu(x, w3_ref, b3_ref, dadj_n)
    xd = gcn_relu(xd, w4_ref, b4_ref, dadj_n)

    # x += 0.2 * x_d ; x = mask(x)      (all elementwise math in f32)
    x = msk * (x.astype(jnp.float32) + 0.2 * xd.astype(jnp.float32))  # [Bb,S,D]

    # Attention pooling, algebraically simplified:
    #   sum_i (x @ text^T)[i, j] == (sum_i x[i, :]) . text[j, :]
    # so the [S, S] alpha_mat is never materialized.
    colsum_x = jnp.sum(x, axis=1)                              # [Bb, D]
    logits = jnp.sum(colsum_x[:, None, :] * text, axis=2)      # [Bb, S]
    logits = logits - jnp.max(logits, axis=1, keepdims=True)
    e = jnp.exp(logits)
    alpha = e / jnp.sum(e, axis=1, keepdims=True)              # exact denominator
    pooled = jnp.sum(alpha[:, :, None] * text, axis=1)         # [Bb, D]
    pooled_ref[...] = pooled[:, None, :]                       # [Bb, 1, D]


# -----------------------------------------------------------------------------
# Wrapper: block-size / VMEM heuristics and the pallas_call
# -----------------------------------------------------------------------------
def _default_act_dtype():
    """bf16 inter-layer activations on v6e/v7x; f32 on older chips (no bf16 VALU)."""
    try:
        kind = jax.devices()[0].device_kind.lower()
    except Exception:
        return jnp.float32
    if any(g in kind for g in ("v2", "v3", "v4", "v5")):
        return jnp.float32
    return jnp.bfloat16


def _vmem_bytes_estimate(Bb, S, D):
    """Rough per-grid-step VMEM footprint (bytes) used to size block_b."""
    lane = lambda n: max(n, 128)            # last dim pads to a full lane group
    sub = lambda n: ((n + 7) // 8) * 8      # second-minor pads to sublanes of 8
    act = Bb * sub(S) * lane(D)
    est = 2 * act * 4                               # text f32, double-buffered
    est += 2 * 2 * Bb * sub(S) * lane(S) * 2        # adj + d_adj bf16, double-buffered
    est += 2 * Bb * sub(1) * lane(4) * 4            # aux block, double-buffered
    est += 4 * (sub(D) * lane(D) * 2 + sub(1) * lane(D) * 4)  # weights+biases (1 buf)
    est += 2 * Bb * sub(1) * lane(D) * 4            # pooled output, double-buffered
    est += 6 * act * 4                              # live intermediates headroom
    return est


def _choose_block_b(B, block_b, S, D, vmem_budget):
    """Largest divisor of B that fits the budget, preferring >= 4 grid steps."""
    cands = [d for d in range(1, min(block_b, B) + 1)
             if B % d == 0 and _vmem_bytes_estimate(d, S, D) <= vmem_budget]
    if not cands:
        return 1
    deep = [d for d in cands if B // d >= 4]   # pipeline depth / v7x megacore
    if deep and 2 * max(deep) >= max(cands):
        return max(deep)
    return max(cands)


def _normalize_adj(a):
    """GraphConvolution's adj / (rowsum + 1), done once, shipped as bf16."""
    a = a.astype(jnp.float32)
    return (a / (jnp.sum(a, axis=2, keepdims=True) + 1.0)).astype(jnp.bfloat16)


def intergcn_pallas(text_out, adj, d_adj, a0, a1, text_len, aspect_len, params,
                    *, block_b=8, vmem_budget_bytes=48 << 20, act_dtype=None):
    """Runs the post-BERT INTERGCN compute in a Pallas kernel.

    text_out:   [B, S, D] float32
    adj, d_adj: [B, S, S] float32 (raw, un-normalized)
    a0, a1, text_len, aspect_len: [B] int32 per-batch scalars
    returns:    [B, P] float32
    """
    B, S, D = text_out.shape
    if act_dtype is None:
        act_dtype = _default_act_dtype()

    Bb = _choose_block_b(B, block_b, S, D, vmem_budget_bytes)
    nb = B // Bb

    # Per-batch scalar block: (a0, a1, text_len, 1/context_len).
    # context_len is clamped to >= 1 to avoid the inf/NaN the PyTorch source
    # would produce when the whole text is the aspect.
    ctx = jnp.maximum((text_len - aspect_len).astype(jnp.float32), 1.0)
    aux = jnp.stack([a0.astype(jnp.float32),
                     a1.astype(jnp.float32),
                     text_len.astype(jnp.float32),
                     1.0 / ctx], axis=-1)[:, None, :]            # [B, 1, 4]

    adj_n = _normalize_adj(adj)
    dadj_n = _normalize_adj(d_adj)

    est = _vmem_bytes_estimate(Bb, S, D)
    vmem_limit = int(min(max(est + (8 << 20), 32 << 20), 56 << 20))

    per_b3 = lambda b: (b, 0, 0)
    const2 = lambda b: (0, 0)

    def build(single_buffer_weights):
        const_kwargs = ({"pipeline_mode": pl.Buffered(1)}
                        if single_buffer_weights else {})
        in_specs = [
            pl.BlockSpec((Bb, 1, 4), per_b3),     # aux scalars
            pl.BlockSpec((Bb, S, D), per_b3),     # text_out (f32)
            pl.BlockSpec((Bb, S, S), per_b3),     # adj_n   (bf16)
            pl.BlockSpec((Bb, S, S), per_b3),     # d_adj_n (bf16)
        ]
        for _ in range(4):
            # Constant-index weight / bias blocks: single-buffered when supported.
            in_specs.append(pl.BlockSpec((D, D), const2, **const_kwargs))
            in_specs.append(pl.BlockSpec((1, D), const2, **const_kwargs))
        return pl.pallas_call(
            functools.partial(_intergcn_kernel, act_dtype=act_dtype),
            out_shape=jax.ShapeDtypeStruct((B, 1, D), jnp.float32),
            grid_spec=pltpu.PrefetchScalarGridSpec(
                num_scalar_prefetch=0,
                grid=(nb,),
                in_specs=in_specs,
                out_specs=pl.BlockSpec((Bb, 1, D), per_b3)),
            compiler_params=pltpu.CompilerParams(
                dimension_semantics=("parallel",),   # batch blocks independent
                vmem_limit_bytes=vmem_limit))

    args = (aux, text_out.astype(jnp.float32), adj_n, dadj_n,
            params["w1"].astype(jnp.bfloat16), params["b1"],
            params["w2"].astype(jnp.bfloat16), params["b2"],
            params["w3"].astype(jnp.bfloat16), params["b3"],
            params["w4"].astype(jnp.bfloat16), params["b4"])

    single = hasattr(pl, "Buffered")
    try:
        pooled3 = build(single)(*args)
    except Exception:
        if not single:
            raise
        # Fallback for jax builds that reject pipeline_mode=pl.Buffered(1).
        pooled3 = build(False)(*args)

    pooled = pooled3[:, 0, :]                                    # [B, D]
    # Tiny [D, P] projection hoisted out of the kernel.
    return pooled @ params["fc_w"] + params["fc_b"]              # [B, P]


# -----------------------------------------------------------------------------
# Plain-JAX glue: index arithmetic and the BERT stub
# -----------------------------------------------------------------------------
def compute_position_weight(a0, a1, text_len, aspect_len, seq_len):
    """Vectorized equivalent of INTERGCN_BERT.position_weight's weight tensor."""
    j = jnp.arange(seq_len, dtype=jnp.float32)[None, :]            # [1, S]
    a0f = a0.astype(jnp.float32)[:, None]
    a1f = a1.astype(jnp.float32)[:, None]
    tlf = text_len.astype(jnp.float32)[:, None]
    # clamp matches the kernel's guard against context_len == 0
    ctx = jnp.maximum((text_len - aspect_len).astype(jnp.float32)[:, None], 1.0)
    w_left = 1.0 - (a0f - j) / ctx
    w_right = 1.0 - (j - a1f) / ctx
    w = jnp.where(j < a0f, w_left,
                  jnp.where(j <= a1f, 0.0,
                            jnp.where(j < tlf, w_right, 0.0)))
    return w[..., None].astype(jnp.float32)                        # [B, S, 1]


def compute_aspect_mask(a0, a1, seq_len):
    """Vectorized equivalent of INTERGCN_BERT.mask's mask tensor."""
    j = jnp.arange(seq_len)[None, :]
    m = (j >= a0[:, None]) & (j <= a1[:, None])
    return m.astype(jnp.float32)[..., None]                        # [B, S, 1]


def make_params(key, bert_dim, polarities_dim):
    ks = jax.random.split(key, 10)
    s = 1.0 / np.sqrt(bert_dim)
    u = lambda k, shape: jax.random.uniform(k, shape, jnp.float32, -s, s)
    return {
        "w1": u(ks[0], (bert_dim, bert_dim)), "b1": u(ks[1], (1, bert_dim)),
        "w2": u(ks[2], (bert_dim, bert_dim)), "b2": u(ks[3], (1, bert_dim)),
        "w3": u(ks[4], (bert_dim, bert_dim)), "b3": u(ks[5], (1, bert_dim)),
        "w4": u(ks[6], (bert_dim, bert_dim)), "b4": u(ks[7], (1, bert_dim)),
        # fc weight stored pre-transposed: equals nn.Linear.weight.T
        "fc_w": u(ks[8], (bert_dim, polarities_dim)),
        "fc_b": u(ks[9], (1, polarities_dim)),
    }


def intergcn_bert_forward(inputs, params, embed_table):
    """Mirrors INTERGCN_BERT.forward; BERT is a deterministic embedding stub."""
    (text_bert_indices, bert_segments_ids, aspect_indices,
     left_indices, text_indices, adj, d_adj) = inputs
    del bert_segments_ids  # only consumed by the (stubbed) BERT encoder

    text_len = jnp.sum(text_indices != 0, axis=-1)
    aspect_len = jnp.sum(aspect_indices != 0, axis=-1)
    left_len = jnp.sum(left_indices != 0, axis=-1)
    a0 = left_len
    a1 = left_len + aspect_len - 1

    # TODO(synk): self.bert is an external pretrained encoder; replaced here by
    # a deterministic embedding-table lookup producing encoder_layer [B, S, D].
    text_out = embed_table[text_bert_indices].astype(jnp.float32)

    return intergcn_pallas(text_out, adj.astype(jnp.float32),
                           d_adj.astype(jnp.float32),
                           a0, a1, text_len, aspect_len, params)


# -----------------------------------------------------------------------------
# Pure-JAX f32 reference (mirrors the PyTorch math), for a numeric sanity check.
# -----------------------------------------------------------------------------
def reference_forward(text_out, adj, d_adj, pw, msk, params):
    hi = jax.lax.Precision.HIGHEST

    def gcn(x, w, b, a):
        hidden = jnp.matmul(x, w, precision=hi)
        denom = jnp.sum(a, axis=2, keepdims=True) + 1.0
        return jnp.matmul(a, hidden, precision=hi) / denom + b

    x = jax.nn.relu(gcn(pw * text_out, params["w1"], params["b1"], adj))
    x = jax.nn.relu(gcn(pw * x, params["w2"], params["b2"], adj))
    xd = jax.nn.relu(gcn(pw * x, params["w3"], params["b3"], d_adj))
    xd = jax.nn.relu(gcn(pw * xd, params["w4"], params["b4"], d_adj))
    x = msk * (x + 0.2 * xd)
    alpha_mat = jnp.matmul(x, jnp.swapaxes(text_out, 1, 2), precision=hi)
    alpha = jax.nn.softmax(jnp.sum(alpha_mat, axis=1, keepdims=True), axis=2)
    pooled = jnp.matmul(alpha, text_out, precision=hi)[:, 0, :]
    return jnp.matmul(pooled, params["fc_w"], precision=hi) + params["fc_b"]


# -----------------------------------------------------------------------------
if __name__ == "__main__":
    B, S, D, P, VOCAB = 2, 8, 32, 3, 50

    key = jax.random.PRNGKey(0)
    k_emb, k_par, k_adj, k_dadj, k_ids = jax.random.split(key, 5)

    params = make_params(k_par, D, P)
    embed_table = jax.random.normal(k_emb, (VOCAB, D), jnp.float32)

    # Deterministic synthetic index inputs (1..VOCAB-1 nonzero, 0 = padding).
    # batch 0: text_len=7, aspect_len=2, left_len=2 -> aspect span [2, 3]
    # batch 1: text_len=6, aspect_len=1, left_len=3 -> aspect span [3, 3]
    text_lens = np.array([7, 6])
    aspect_lens = np.array([2, 1])
    left_lens = np.array([2, 3])

    rng = np.random.RandomState(0)

    def padded_ids(lengths, seq):
        out = np.zeros((B, seq), dtype=np.int32)
        for i, L in enumerate(lengths):
            out[i, :L] = rng.randint(1, VOCAB, size=L)
        return jnp.asarray(out)

    text_bert_indices = padded_ids(text_lens, S)
    bert_segments_ids = jnp.zeros((B, S), jnp.int32)
    aspect_indices = padded_ids(aspect_lens, S)
    left_indices = padded_ids(left_lens, S)
    text_indices = text_bert_indices  # same padding pattern -> same text_len

    adj = (jax.random.uniform(k_adj, (B, S, S)) > 0.5).astype(jnp.float32)
    d_adj = (jax.random.uniform(k_dadj, (B, S, S)) > 0.5).astype(jnp.float32)

    inputs = (text_bert_indices, bert_segments_ids, aspect_indices,
              left_indices, text_indices, adj, d_adj)

    out = intergcn_bert_forward(inputs, params, embed_table)
    out = jax.block_until_ready(out)
    assert out.shape == (B, P), out.shape

    # Numeric sanity check against a pure-JAX f32 reference of the same math.
    # (Tolerance covers bf16 MXU operands, bf16 normalized adjacency, and
    # bf16 inter-layer activations on v6e/v7x.)
    text_len = jnp.sum(text_indices != 0, axis=-1)
    aspect_len = jnp.sum(aspect_indices != 0, axis=-1)
    left_len = jnp.sum(left_indices != 0, axis=-1)
    a0, a1 = left_len, left_len + aspect_len - 1
    text_out = embed_table[text_bert_indices].astype(jnp.float32)
    pw = compute_position_weight(a0, a1, text_len, aspect_len, S)
    msk = compute_aspect_mask(a0, a1, S)
    ref = reference_forward(text_out, adj, d_adj, pw, msk, params)
    np.testing.assert_allclose(np.asarray(out), np.asarray(ref),
                               rtol=5e-2, atol=5e-2)

    print("KERNEL_OK")
</pallas_src>

<mosaic_0001>
module attributes {stable_mosaic.version = 11 : i64} {
  func.func @_intergcn_kernel(%arg0: i32, %arg1: memref<2x1x4xf32, #tpu.memory_space<vmem>>, %arg2: memref<2x8x32xf32, #tpu.memory_space<vmem>>, %arg3: memref<2x8x8xbf16, #tpu.memory_space<vmem>>, %arg4: memref<2x8x8xbf16, #tpu.memory_space<vmem>>, %arg5: memref<32x32xbf16, #tpu.memory_space<vmem>>, %arg6: memref<1x32xf32, #tpu.memory_space<vmem>>, %arg7: memref<32x32xbf16, #tpu.memory_space<vmem>>, %arg8: memref<1x32xf32, #tpu.memory_space<vmem>>, %arg9: memref<32x32xbf16, #tpu.memory_space<vmem>>, %arg10: memref<1x32xf32, #tpu.memory_space<vmem>>, %arg11: memref<32x32xbf16, #tpu.memory_space<vmem>>, %arg12: memref<1x32xf32, #tpu.memory_space<vmem>>, %arg13: memref<2x1x32xf32, #tpu.memory_space<vmem>>) attributes {dimension_semantics = [#tpu.dimension_semantics<parallel>], iteration_bounds = array<i64: 1>, scalar_prefetch = 0 : i64, scratch_operands = 0 : i64, tpu.core_type = #tpu.core_type<tc>, window_params = [{transform_indices = @transform_0, window_bounds = array<i64: 2, 1, 4>}, {transform_indices = @transform_1, window_bounds = array<i64: 2, 8, 32>}, {transform_indices = @transform_2, window_bounds = array<i64: 2, 8, 8>}, {transform_indices = @transform_3, window_bounds = array<i64: 2, 8, 8>}, {pipeline_mode = #tpu.pipeline_mode<synchronous>, transform_indices = @transform_4, window_bounds = array<i64: 32, 32>}, {pipeline_mode = #tpu.pipeline_mode<synchronous>, transform_indices = @transform_5, window_bounds = array<i64: 1, 32>}, {pipeline_mode = #tpu.pipeline_mode<synchronous>, transform_indices = @transform_6, window_bounds = array<i64: 32, 32>}, {pipeline_mode = #tpu.pipeline_mode<synchronous>, transform_indices = @transform_7, window_bounds = array<i64: 1, 32>}, {pipeline_mode = #tpu.pipeline_mode<synchronous>, transform_indices = @transform_8, window_bounds = array<i64: 32, 32>}, {pipeline_mode = #tpu.pipeline_mode<synchronous>, transform_indices = @transform_9, window_bounds = array<i64: 1, 32>}, {pipeline_mode = #tpu.pipeline_mode<synchronous>, transform_indices = @transform_10, window_bounds = array<i64: 32, 32>}, {pipeline_mode = #tpu.pipeline_mode<synchronous>, transform_indices = @transform_11, window_bounds = array<i64: 1, 32>}, {transform_indices = @transform_12, window_bounds = array<i64: 2, 1, 32>}]} {
    %c0 = arith.constant 0 : index
    %c0_0 = arith.constant 0 : index
    %c0_1 = arith.constant 0 : index
    %0 = vector.load %arg2[%c0, %c0_0, %c0_1] : memref<2x8x32xf32, #tpu.memory_space<vmem>>, vector<2x8x32xf32>
    %c0_2 = arith.constant 0 : index
    %c0_3 = arith.constant 0 : index
    %c0_4 = arith.constant 0 : index
    %1 = vector.load %arg1[%c0_2, %c0_3, %c0_4] : memref<2x1x4xf32, #tpu.memory_space<vmem>>, vector<2x1x4xf32>
    %2 = vector.extract_strided_slice %1 {offsets = [0, 0, 0], sizes = [2, 1, 1], strides = [1, 1, 1]} : vector<2x1x4xf32> to vector<2x1x1xf32>
    %3 = vector.extract_strided_slice %1 {offsets = [0, 0, 1], sizes = [2, 1, 1], strides = [1, 1, 1]} : vector<2x1x4xf32> to vector<2x1x1xf32>
    %4 = vector.extract_strided_slice %1 {offsets = [0, 0, 2], sizes = [2, 1, 1], strides = [1, 1, 1]} : vector<2x1x4xf32> to vector<2x1x1xf32>
    %5 = vector.extract_strided_slice %1 {offsets = [0, 0, 3], sizes = [2, 1, 1], strides = [1, 1, 1]} : vector<2x1x4xf32> to vector<2x1x1xf32>
    %6 = tpu.iota {dimensions = array<i32: 1>} : vector<2x8x1xi32>
    %7 = arith.sitofp %6 : vector<2x8x1xi32> to vector<2x8x1xf32>
    %8 = vector.broadcast %2 : vector<2x1x1xf32> to vector<2x8x1xf32>
    %9 = arith.subf %8, %7 : vector<2x8x1xf32>
    %10 = vector.broadcast %5 : vector<2x1x1xf32> to vector<2x8x1xf32>
    %11 = arith.mulf %9, %10 : vector<2x8x1xf32>
    %cst = arith.constant 1.000000e+00 : f32
    %12 = vector.broadcast %cst : f32 to vector<2x8x1xf32>
    %13 = arith.subf %12, %11 : vector<2x8x1xf32>
    %14 = vector.broadcast %3 : vector<2x1x1xf32> to vector<2x8x1xf32>
    %15 = arith.subf %7, %14 : vector<2x8x1xf32>
    %16 = vector.broadcast %5 : vector<2x1x1xf32> to vector<2x8x1xf32>
    %17 = arith.mulf %15, %16 : vector<2x8x1xf32>
    %cst_5 = arith.constant 1.000000e+00 : f32
    %18 = vector.broadcast %cst_5 : f32 to vector<2x8x1xf32>
    %19 = arith.subf %18, %17 : vector<2x8x1xf32>
    %20 = vector.broadcast %2 : vector<2x1x1xf32> to vector<2x8x1xf32>
    %21 = arith.cmpf olt, %7, %20 : vector<2x8x1xf32>
    %22 = vector.broadcast %3 : vector<2x1x1xf32> to vector<2x8x1xf32>
    %23 = arith.cmpf ole, %7, %22 : vector<2x8x1xf32>
    %24 = vector.broadcast %4 : vector<2x1x1xf32> to vector<2x8x1xf32>
    %25 = arith.cmpf olt, %7, %24 : vector<2x8x1xf32>
    %cst_6 = arith.constant 0.000000e+00 : f32
    %26 = vector.broadcast %cst_6 : f32 to vector<2x8x1xf32>
    %27 = arith.select %25, %19, %26 : vector<2x8x1xi1>, vector<2x8x1xf32>
    %cst_7 = arith.constant 0.000000e+00 : f32
    %28 = vector.broadcast %cst_7 : f32 to vector<2x8x1xf32>
    %29 = arith.select %23, %28, %27 : vector<2x8x1xi1>, vector<2x8x1xf32>
    %30 = arith.select %21, %13, %29 : vector<2x8x1xi1>, vector<2x8x1xf32>
    %31 = vector.broadcast %2 : vector<2x1x1xf32> to vector<2x8x1xf32>
    %32 = arith.cmpf oge, %7, %31 : vector<2x8x1xf32>
    %33 = vector.broadcast %3 : vector<2x1x1xf32> to vector<2x8x1xf32>
    %34 = arith.cmpf ole, %7, %33 : vector<2x8x1xf32>
    %35 = arith.andi %32, %34 : vector<2x8x1xi1>
    %36 = arith.extui %35 : vector<2x8x1xi1> to vector<2x8x1xi32>
    %37 = arith.sitofp %36 : vector<2x8x1xi32> to vector<2x8x1xf32>
    %c0_8 = arith.constant 0 : index
    %c0_9 = arith.constant 0 : index
    %c0_10 = arith.constant 0 : index
    %38 = vector.load %arg3[%c0_8, %c0_9, %c0_10] : memref<2x8x8xbf16, #tpu.memory_space<vmem>>, vector<2x8x8xbf16>
    %c0_11 = arith.constant 0 : index
    %c0_12 = arith.constant 0 : index
    %c0_13 = arith.constant 0 : index
    %39 = vector.load %arg4[%c0_11, %c0_12, %c0_13] : memref<2x8x8xbf16, #tpu.memory_space<vmem>>, vector<2x8x8xbf16>
    %40 = vector.broadcast %30 : vector<2x8x1xf32> to vector<2x8x32xf32>
    %41 = arith.mulf %40, %0 : vector<2x8x32xf32>
    %42 = vector.shape_cast %41 : vector<2x8x32xf32> to vector<16x32xf32>
    %43 = arith.truncf %42 : vector<16x32xf32> to vector<16x32xbf16>
    %c0_14 = arith.constant 0 : index
    %c0_15 = arith.constant 0 : index
    %44 = vector.load %arg5[%c0_14, %c0_15] : memref<32x32xbf16, #tpu.memory_space<vmem>>, vector<32x32xbf16>
    %cst_16 = arith.constant dense<0.000000e+00> : vector<16x32xf32>
    %45 = tpu.matmul %43, %44, %cst_16 {dimension_numbers = #tpu.dot_dimension_numbers<[1], [0], [0], [1], [0, 0, 1, 1], [], []>} : vector<16x32xbf16>, vector<32x32xbf16>, vector<16x32xf32> -> vector<16x32xf32>
    %46 = vector.shape_cast %45 : vector<16x32xf32> to vector<2x8x32xf32>
    %47 = arith.truncf %46 : vector<2x8x32xf32> to vector<2x8x32xbf16>
    "tpu.trace_start"() <{level = 10 : i32, message = "bij,bjd->bid"}> : () -> ()
    %cst_17 = arith.constant dense<0.000000e+00> : vector<2x8x32xf32>
    %48 = tpu.matmul %38, %47, %cst_17 {dimension_numbers = #tpu.dot_dimension_numbers<[2], [1], [1], [2], [0, 0, 0, 1, 1, 2], [0], [0]>} : vector<2x8x8xbf16>, vector<2x8x32xbf16>, vector<2x8x32xf32> -> vector<2x8x32xf32>
    "tpu.trace_stop"() : () -> ()
    %c0_18 = arith.constant 0 : index
    %c0_19 = arith.constant 0 : index
    %49 = vector.load %arg6[%c0_18, %c0_19] : memref<1x32xf32, #tpu.memory_space<vmem>>, vector<1x32xf32>
    %50 = vector.shape_cast %49 : vector<1x32xf32> to vector<1x1x32xf32>
    %51 = vector.broadcast %50 : vector<1x1x32xf32> to vector<2x8x32xf32>
    %52 = arith.addf %48, %51 : vector<2x8x32xf32>
    %cst_20 = arith.constant 0.000000e+00 : f32
    %53 = vector.broadcast %cst_20 : f32 to vector<2x8x32xf32>
    %54 = arith.maximumf %52, %53 : vector<2x8x32xf32>
    %55 = arith.truncf %54 : vector<2x8x32xf32> to vector<2x8x32xbf16>
    %56 = arith.extf %55 : vector<2x8x32xbf16> to vector<2x8x32xf32>
    %57 = vector.broadcast %30 : vector<2x8x1xf32> to vector<2x8x32xf32>
    %58 = arith.mulf %57, %56 : vector<2x8x32xf32>
    %59 = vector.shape_cast %58 : vector<2x8x32xf32> to vector<16x32xf32>
    %60 = arith.truncf %59 : vector<16x32xf32> to vector<16x32xbf16>
    %c0_21 = arith.constant 0 : index
    %c0_22 = arith.constant 0 : index
    %61 = vector.load %arg7[%c0_21, %c0_22] : memref<32x32xbf16, #tpu.memory_space<vmem>>, vector<32x32xbf16>
    %cst_23 = arith.constant dense<0.000000e+00> : vector<16x32xf32>
    %62 = tpu.matmul %60, %61, %cst_23 {dimension_numbers = #tpu.dot_dimension_numbers<[1], [0], [0], [1], [0, 0, 1, 1], [], []>} : vector<16x32xbf16>, vector<32x32xbf16>, vector<16x32xf32> -> vector<16x32xf32>
    %63 = vector.shape_cast %62 : vector<16x32xf32> to vector<2x8x32xf32>
    %64 = arith.truncf %63 : vector<2x8x32xf32> to vector<2x8x32xbf16>
    "tpu.trace_start"() <{level = 10 : i32, message = "bij,bjd->bid"}> : () -> ()
    %cst_24 = arith.constant dense<0.000000e+00> : vector<2x8x32xf32>
    %65 = tpu.matmul %38, %64, %cst_24 {dimension_numbers = #tpu.dot_dimension_numbers<[2], [1], [1], [2], [0, 0, 0, 1, 1, 2], [0], [0]>} : vector<2x8x8xbf16>, vector<2x8x32xbf16>, vector<2x8x32xf32> -> vector<2x8x32xf32>
    "tpu.trace_stop"() : () -> ()
    %c0_25 = arith.constant 0 : index
    %c0_26 = arith.constant 0 : index
    %66 = vector.load %arg8[%c0_25, %c0_26] : memref<1x32xf32, #tpu.memory_space<vmem>>, vector<1x32xf32>
    %67 = vector.shape_cast %66 : vector<1x32xf32> to vector<1x1x32xf32>
    %68 = vector.broadcast %67 : vector<1x1x32xf32> to vector<2x8x32xf32>
    %69 = arith.addf %65, %68 : vector<2x8x32xf32>
    %cst_27 = arith.constant 0.000000e+00 : f32
    %70 = vector.broadcast %cst_27 : f32 to vector<2x8x32xf32>
    %71 = arith.maximumf %69, %70 : vector<2x8x32xf32>
    %72 = arith.truncf %71 : vector<2x8x32xf32> to vector<2x8x32xbf16>
    %73 = arith.extf %72 : vector<2x8x32xbf16> to vector<2x8x32xf32>
    %74 = vector.broadcast %30 : vector<2x8x1xf32> to vector<2x8x32xf32>
    %75 = arith.mulf %74, %73 : vector<2x8x32xf32>
    %76 = vector.shape_cast %75 : vector<2x8x32xf32> to vector<16x32xf32>
    %77 = arith.truncf %76 : vector<16x32xf32> to vector<16x32xbf16>
    %c0_28 = arith.constant 0 : index
    %c0_29 = arith.constant 0 : index
    %78 = vector.load %arg9[%c0_28, %c0_29] : memref<32x32xbf16, #tpu.memory_space<vmem>>, vector<32x32xbf16>
    %cst_30 = arith.constant dense<0.000000e+00> : vector<16x32xf32>
    %79 = tpu.matmul %77, %78, %cst_30 {dimension_numbers = #tpu.dot_dimension_numbers<[1], [0], [0], [1], [0, 0, 1, 1], [], []>} : vector<16x32xbf16>, vector<32x32xbf16>, vector<16x32xf32> -> vector<16x32xf32>
    %80 = vector.shape_cast %79 : vector<16x32xf32> to vector<2x8x32xf32>
    %81 = arith.truncf %80 : vector<2x8x32xf32> to vector<2x8x32xbf16>
    "tpu.trace_start"() <{level = 10 : i32, message = "bij,bjd->bid"}> : () -> ()
    %cst_31 = arith.constant dense<0.000000e+00> : vector<2x8x32xf32>
    %82 = tpu.matmul %39, %81, %cst_31 {dimension_numbers = #tpu.dot_dimension_numbers<[2], [1], [1], [2], [0, 0, 0, 1, 1, 2], [0], [0]>} : vector<2x8x8xbf16>, vector<2x8x32xbf16>, vector<2x8x32xf32> -> vector<2x8x32xf32>
    "tpu.trace_stop"() : () -> ()
    %c0_32 = arith.constant 0 : index
    %c0_33 = arith.constant 0 : index
    %83 = vector.load %arg10[%c0_32, %c0_33] : memref<1x32xf32, #tpu.memory_space<vmem>>, vector<1x32xf32>
    %84 = vector.shape_cast %83 : vector<1x32xf32> to vector<1x1x32xf32>
    %85 = vector.broadcast %84 : vector<1x1x32xf32> to vector<2x8x32xf32>
    %86 = arith.addf %82, %85 : vector<2x8x32xf32>
    %cst_34 = arith.constant 0.000000e+00 : f32
    %87 = vector.broadcast %cst_34 : f32 to vector<2x8x32xf32>
    %88 = arith.maximumf %86, %87 : vector<2x8x32xf32>
    %89 = arith.truncf %88 : vector<2x8x32xf32> to vector<2x8x32xbf16>
    %90 = arith.extf %89 : vector<2x8x32xbf16> to vector<2x8x32xf32>
    %91 = vector.broadcast %30 : vector<2x8x1xf32> to vector<2x8x32xf32>
    %92 = arith.mulf %91, %90 : vector<2x8x32xf32>
    %93 = vector.shape_cast %92 : vector<2x8x32xf32> to vector<16x32xf32>
    %94 = arith.truncf %93 : vector<16x32xf32> to vector<16x32xbf16>
    %c0_35 = arith.constant 0 : index
    %c0_36 = arith.constant 0 : index
    %95 = vector.load %arg11[%c0_35, %c0_36] : memref<32x32xbf16, #tpu.memory_space<vmem>>, vector<32x32xbf16>
    %cst_37 = arith.constant dense<0.000000e+00> : vector<16x32xf32>
    %96 = tpu.matmul %94, %95, %cst_37 {dimension_numbers = #tpu.dot_dimension_numbers<[1], [0], [0], [1], [0, 0, 1, 1], [], []>} : vector<16x32xbf16>, vector<32x32xbf16>, vector<16x32xf32> -> vector<16x32xf32>
    %97 = vector.shape_cast %96 : vector<16x32xf32> to vector<2x8x32xf32>
    %98 = arith.truncf %97 : vector<2x8x32xf32> to vector<2x8x32xbf16>
    "tpu.trace_start"() <{level = 10 : i32, message = "bij,bjd->bid"}> : () -> ()
    %cst_38 = arith.constant dense<0.000000e+00> : vector<2x8x32xf32>
    %99 = tpu.matmul %39, %98, %cst_38 {dimension_numbers = #tpu.dot_dimension_numbers<[2], [1], [1], [2], [0, 0, 0, 1, 1, 2], [0], [0]>} : vector<2x8x8xbf16>, vector<2x8x32xbf16>, vector<2x8x32xf32> -> vector<2x8x32xf32>
    "tpu.trace_stop"() : () -> ()
    %c0_39 = arith.constant 0 : index
    %c0_40 = arith.constant 0 : index
    %100 = vector.load %arg12[%c0_39, %c0_40] : memref<1x32xf32, #tpu.memory_space<vmem>>, vector<1x32xf32>
    %101 = vector.shape_cast %100 : vector<1x32xf32> to vector<1x1x32xf32>
    %102 = vector.broadcast %101 : vector<1x1x32xf32> to vector<2x8x32xf32>
    %103 = arith.addf %99, %102 : vector<2x8x32xf32>
    %cst_41 = arith.constant 0.000000e+00 : f32
    %104 = vector.broadcast %cst_41 : f32 to vector<2x8x32xf32>
    %105 = arith.maximumf %103, %104 : vector<2x8x32xf32>
    %106 = arith.truncf %105 : vector<2x8x32xf32> to vector<2x8x32xbf16>
    %107 = arith.extf %72 : vector<2x8x32xbf16> to vector<2x8x32xf32>
    %108 = arith.extf %106 : vector<2x8x32xbf16> to vector<2x8x32xf32>
    %cst_42 = arith.constant 2.000000e-01 : f32
    %109 = vector.broadcast %cst_42 : f32 to vector<2x8x32xf32>
    %110 = arith.mulf %109, %108 : vector<2x8x32xf32>
    %111 = arith.addf %107, %110 : vector<2x8x32xf32>
    %112 = vector.broadcast %37 : vector<2x8x1xf32> to vector<2x8x32xf32>
    %113 = arith.mulf %112, %111 : vector<2x8x32xf32>
    %cst_43 = arith.constant dense<0.000000e+00> : vector<2x32xf32>
    %114 = vector.multi_reduction <add>, %113, %cst_43 [1] : vector<2x8x32xf32> to vector<2x32xf32>
    %115 = vector.shape_cast %114 : vector<2x32xf32> to vector<2x1x32xf32>
    %116 = vector.broadcast %115 : vector<2x1x32xf32> to vector<2x8x32xf32>
    %117 = arith.mulf %116, %0 : vector<2x8x32xf32>
    %cst_44 = arith.constant dense<0.000000e+00> : vector<2x8xf32>
    %118 = vector.multi_reduction <add>, %117, %cst_44 [2] : vector<2x8x32xf32> to vector<2x8xf32>
    %cst_45 = arith.constant dense<0xFF800000> : vector<2xf32>
    %119 = vector.multi_reduction <maximumf>, %118, %cst_45 [1] : vector<2x8xf32> to vector<2xf32>
    %120 = vector.shape_cast %119 : vector<2xf32> to vector<2x1xf32>
    %121 = vector.broadcast %120 : vector<2x1xf32> to vector<2x8xf32>
    %122 = arith.subf %118, %121 : vector<2x8xf32>
    %123 = math.exp %122 : vector<2x8xf32>
    %cst_46 = arith.constant dense<0.000000e+00> : vector<2xf32>
    %124 = vector.multi_reduction <add>, %123, %cst_46 [1] : vector<2x8xf32> to vector<2xf32>
    %125 = vector.shape_cast %124 : vector<2xf32> to vector<2x1xf32>
    %126 = vector.broadcast %125 : vector<2x1xf32> to vector<2x8xf32>
    %127 = arith.divf %123, %126 : vector<2x8xf32>
    %128 = vector.shape_cast %127 : vector<2x8xf32> to vector<2x8x1xf32>
    %129 = vector.broadcast %128 : vector<2x8x1xf32> to vector<2x8x32xf32>
    %130 = arith.mulf %129, %0 : vector<2x8x32xf32>
    %cst_47 = arith.constant dense<0.000000e+00> : vector<2x32xf32>
    %131 = vector.multi_reduction <add>, %130, %cst_47 [1] : vector<2x8x32xf32> to vector<2x32xf32>
    %132 = vector.shape_cast %131 : vector<2x32xf32> to vector<2x1x32xf32>
    %c0_48 = arith.constant 0 : index
    %c0_49 = arith.constant 0 : index
    %c0_50 = arith.constant 0 : index
    %133 = vector.load %arg13[%c0_48, %c0_49, %c0_50] : memref<2x1x32xf32, #tpu.memory_space<vmem>>, vector<2x1x32xf32>
    tpu.vector_store %arg13[%c0_48, %c0_49, %c0_50], %132 {strides = array<i32>} : memref<2x1x32xf32, #tpu.memory_space<vmem>>, vector<2x1x32xf32>,
    return
  }
  func.func @transform_0(%arg0: i32) -> (i32, i32, i32) {
    %c0_i32 = arith.constant 0 : i32
    %c0_i32_0 = arith.constant 0 : i32
    %c0_i32_1 = arith.constant 0 : i32
    return %arg0, %c0_i32, %c0_i32_0 : i32, i32, i32
  }
  func.func @transform_1(%arg0: i32) -> (i32, i32, i32) {
    %c0_i32 = arith.constant 0 : i32
    %c0_i32_0 = arith.constant 0 : i32
    %c0_i32_1 = arith.constant 0 : i32
    return %arg0, %c0_i32, %c0_i32_0 : i32, i32, i32
  }
  func.func @transform_2(%arg0: i32) -> (i32, i32, i32) {
    %c0_i32 = arith.constant 0 : i32
    %c0_i32_0 = arith.constant 0 : i32
    %c0_i32_1 = arith.constant 0 : i32
    return %arg0, %c0_i32, %c0_i32_0 : i32, i32, i32
  }
  func.func @transform_3(%arg0: i32) -> (i32, i32, i32) {
    %c0_i32 = arith.constant 0 : i32
    %c0_i32_0 = arith.constant 0 : i32
    %c0_i32_1 = arith.constant 0 : i32
    return %arg0, %c0_i32, %c0_i32_0 : i32, i32, i32
  }
  func.func @transform_4(%arg0: i32) -> (i32, i32) {
    %c0_i32 = arith.constant 0 : i32
    %c0_i32_0 = arith.constant 0 : i32
    %c0_i32_1 = arith.constant 0 : i32
    return %c0_i32, %c0_i32_0 : i32, i32
  }
  func.func @transform_5(%arg0: i32) -> (i32, i32) {
    %c0_i32 = arith.constant 0 : i32
    %c0_i32_0 = arith.constant 0 : i32
    %c0_i32_1 = arith.constant 0 : i32
    return %c0_i32, %c0_i32_0 : i32, i32
  }
  func.func @transform_6(%arg0: i32) -> (i32, i32) {
    %c0_i32 = arith.constant 0 : i32
    %c0_i32_0 = arith.constant 0 : i32
    %c0_i32_1 = arith.constant 0 : i32
    return %c0_i32, %c0_i32_0 : i32, i32
  }
  func.func @transform_7(%arg0: i32) -> (i32, i32) {
    %c0_i32 = arith.constant 0 : i32
    %c0_i32_0 = arith.constant 0 : i32
    %c0_i32_1 = arith.constant 0 : i32
    return %c0_i32, %c0_i32_0 : i32, i32
  }
  func.func @transform_8(%arg0: i32) -> (i32, i32) {
    %c0_i32 = arith.constant 0 : i32
    %c0_i32_0 = arith.constant 0 : i32
    %c0_i32_1 = arith.constant 0 : i32
    return %c0_i32, %c0_i32_0 : i32, i32
  }
  func.func @transform_9(%arg0: i32) -> (i32, i32) {
    %c0_i32 = arith.constant 0 : i32
    %c0_i32_0 = arith.constant 0 : i32
    %c0_i32_1 = arith.constant 0 : i32
    return %c0_i32, %c0_i32_0 : i32, i32
  }
  func.func @transform_10(%arg0: i32) -> (i32, i32) {
    %c0_i32 = arith.constant 0 : i32
    %c0_i32_0 = arith.constant 0 : i32
    %c0_i32_1 = arith.constant 0 : i32
    return %c0_i32, %c0_i32_0 : i32, i32
  }
  func.func @transform_11(%arg0: i32) -> (i32, i32) {
    %c0_i32 = arith.constant 0 : i32
    %c0_i32_0 = arith.constant 0 : i32
    %c0_i32_1 = arith.constant 0 : i32
    return %c0_i32, %c0_i32_0 : i32, i32
  }
  func.func @transform_12(%arg0: i32) -> (i32, i32, i32) {
    %c0_i32 = arith.constant 0 : i32
    %c0_i32_0 = arith.constant 0 : i32
    %c0_i32_1 = arith.constant 0 : i32
    return %arg0, %c0_i32, %c0_i32_0 : i32, i32, i32
  }
}

module attributes {stable_mosaic.version = 11 : i64} {
  func.func @_intergcn_kernel(%arg0: i32, %arg1: memref<2x1x4xf32, #tpu.memory_space<vmem>>, %arg2: memref<2x8x32xf32, #tpu.memory_space<vmem>>, %arg3: memref<2x8x8xbf16, #tpu.memory_space<vmem>>, %arg4: memref<2x8x8xbf16, #tpu.memory_space<vmem>>, %arg5: memref<32x32xbf16, #tpu.memory_space<vmem>>, %arg6: memref<1x32xf32, #tpu.memory_space<vmem>>, %arg7: memref<32x32xbf16, #tpu.memory_space<vmem>>, %arg8: memref<1x32xf32, #tpu.memory_space<vmem>>, %arg9: memref<32x32xbf16, #tpu.memory_space<vmem>>, %arg10: memref<1x32xf32, #tpu.memory_space<vmem>>, %arg11: memref<32x32xbf16, #tpu.memory_space<vmem>>, %arg12: memref<1x32xf32, #tpu.memory_space<vmem>>, %arg13: memref<2x1x32xf32, #tpu.memory_space<vmem>>) attributes {dimension_semantics = [#tpu.dimension_semantics<parallel>], iteration_bounds = array<i64: 1>, scalar_prefetch = 0 : i64, scratch_operands = 0 : i64, tpu.core_type = #tpu.core_type<tc>, window_params = [{transform_indices = @transform_0, window_bounds = array<i64: 2, 1, 4>}, {transform_indices = @transform_1, window_bounds = array<i64: 2, 8, 32>}, {transform_indices = @transform_2, window_bounds = array<i64: 2, 8, 8>}, {transform_indices = @transform_3, window_bounds = array<i64: 2, 8, 8>}, {pipeline_mode = #tpu.pipeline_mode<synchronous>, transform_indices = @transform_4, window_bounds = array<i64: 32, 32>}, {pipeline_mode = #tpu.pipeline_mode<synchronous>, transform_indices = @transform_5, window_bounds = array<i64: 1, 32>}, {pipeline_mode = #tpu.pipeline_mode<synchronous>, transform_indices = @transform_6, window_bounds = array<i64: 32, 32>}, {pipeline_mode = #tpu.pipeline_mode<synchronous>, transform_indices = @transform_7, window_bounds = array<i64: 1, 32>}, {pipeline_mode = #tpu.pipeline_mode<synchronous>, transform_indices = @transform_8, window_bounds = array<i64: 32, 32>}, {pipeline_mode = #tpu.pipeline_mode<synchronous>, transform_indices = @transform_9, window_bounds = array<i64: 1, 32>}, {pipeline_mode = #tpu.pipeline_mode<synchronous>, transform_indices = @transform_10, window_bounds = array<i64: 32, 32>}, {pipeline_mode = #tpu.pipeline_mode<synchronous>, transform_indices = @transform_11, window_bounds = array<i64: 1, 32>}, {transform_indices = @transform_12, window_bounds = array<i64: 2, 1, 32>}]} {
    %c0 = arith.constant 0 : index
    %c0_0 = arith.constant 0 : index
    %c0_1 = arith.constant 0 : index
    %0 = vector.load %arg2[%c0, %c0_0, %c0_1] : memref<2x8x32xf32, #tpu.memory_space<vmem>>, vector<2x8x32xf32>
    %c0_2 = arith.constant 0 : index
    %c0_3 = arith.constant 0 : index
    %c0_4 = arith.constant 0 : index
    %1 = vector.load %arg1[%c0_2, %c0_3, %c0_4] : memref<2x1x4xf32, #tpu.memory_space<vmem>>, vector<2x1x4xf32>
    %2 = vector.extract_strided_slice %1 {offsets = [0, 0, 0], sizes = [2, 1, 1], strides = [1, 1, 1]} : vector<2x1x4xf32> to vector<2x1x1xf32>
    %3 = vector.extract_strided_slice %1 {offsets = [0, 0, 1], sizes = [2, 1, 1], strides = [1, 1, 1]} : vector<2x1x4xf32> to vector<2x1x1xf32>
    %4 = vector.extract_strided_slice %1 {offsets = [0, 0, 2], sizes = [2, 1, 1], strides = [1, 1, 1]} : vector<2x1x4xf32> to vector<2x1x1xf32>
    %5 = vector.extract_strided_slice %1 {offsets = [0, 0, 3], sizes = [2, 1, 1], strides = [1, 1, 1]} : vector<2x1x4xf32> to vector<2x1x1xf32>
    %6 = tpu.iota {dimensions = array<i32: 1>} : vector<2x8x1xi32>
    %7 = arith.sitofp %6 : vector<2x8x1xi32> to vector<2x8x1xf32>
    %8 = vector.broadcast %2 : vector<2x1x1xf32> to vector<2x8x1xf32>
    %9 = arith.subf %8, %7 : vector<2x8x1xf32>
    %10 = vector.broadcast %5 : vector<2x1x1xf32> to vector<2x8x1xf32>
    %11 = arith.mulf %9, %10 : vector<2x8x1xf32>
    %cst = arith.constant 1.000000e+00 : f32
    %12 = vector.broadcast %cst : f32 to vector<2x8x1xf32>
    %13 = arith.subf %12, %11 : vector<2x8x1xf32>
    %14 = vector.broadcast %3 : vector<2x1x1xf32> to vector<2x8x1xf32>
    %15 = arith.subf %7, %14 : vector<2x8x1xf32>
    %16 = vector.broadcast %5 : vector<2x1x1xf32> to vector<2x8x1xf32>
    %17 = arith.mulf %15, %16 : vector<2x8x1xf32>
    %cst_5 = arith.constant 1.000000e+00 : f32
    %18 = vector.broadcast %cst_5 : f32 to vector<2x8x1xf32>
    %19 = arith.subf %18, %17 : vector<2x8x1xf32>
    %20 = vector.broadcast %2 : vector<2x1x1xf32> to vector<2x8x1xf32>
    %21 = arith.cmpf olt, %7, %20 : vector<2x8x1xf32>
    %22 = vector.broadcast %3 : vector<2x1x1xf32> to vector<2x8x1xf32>
    %23 = arith.cmpf ole, %7, %22 : vector<2x8x1xf32>
    %24 = vector.broadcast %4 : vector<2x1x1xf32> to vector<2x8x1xf32>
    %25 = arith.cmpf olt, %7, %24 : vector<2x8x1xf32>
    %cst_6 = arith.constant 0.000000e+00 : f32
    %26 = vector.broadcast %cst_6 : f32 to vector<2x8x1xf32>
    %27 = arith.select %25, %19, %26 : vector<2x8x1xi1>, vector<2x8x1xf32>
    %cst_7 = arith.constant 0.000000e+00 : f32
    %28 = vector.broadcast %cst_7 : f32 to vector<2x8x1xf32>
    %29 = arith.select %23, %28, %27 : vector<2x8x1xi1>, vector<2x8x1xf32>
    %30 = arith.select %21, %13, %29 : vector<2x8x1xi1>, vector<2x8x1xf32>
    %31 = vector.broadcast %2 : vector<2x1x1xf32> to vector<2x8x1xf32>
    %32 = arith.cmpf oge, %7, %31 : vector<2x8x1xf32>
    %33 = vector.broadcast %3 : vector<2x1x1xf32> to vector<2x8x1xf32>
    %34 = arith.cmpf ole, %7, %33 : vector<2x8x1xf32>
    %35 = arith.andi %32, %34 : vector<2x8x1xi1>
    %36 = arith.extui %35 : vector<2x8x1xi1> to vector<2x8x1xi32>
    %37 = arith.sitofp %36 : vector<2x8x1xi32> to vector<2x8x1xf32>
    %c0_8 = arith.constant 0 : index
    %c0_9 = arith.constant 0 : index
    %c0_10 = arith.constant 0 : index
    %38 = vector.load %arg3[%c0_8, %c0_9, %c0_10] : memref<2x8x8xbf16, #tpu.memory_space<vmem>>, vector<2x8x8xbf16>
    %c0_11 = arith.constant 0 : index
    %c0_12 = arith.constant 0 : index
    %c0_13 = arith.constant 0 : index
    %39 = vector.load %arg4[%c0_11, %c0_12, %c0_13] : memref<2x8x8xbf16, #tpu.memory_space<vmem>>, vector<2x8x8xbf16>
    %40 = vector.broadcast %30 : vector<2x8x1xf32> to vector<2x8x32xf32>
    %41 = arith.mulf %40, %0 : vector<2x8x32xf32>
    %42 = vector.shape_cast %41 : vector<2x8x32xf32> to vector<16x32xf32>
    %43 = arith.truncf %42 : vector<16x32xf32> to vector<16x32xbf16>
    %c0_14 = arith.constant 0 : index
    %c0_15 = arith.constant 0 : index
    %44 = vector.load %arg5[%c0_14, %c0_15] : memref<32x32xbf16, #tpu.memory_space<vmem>>, vector<32x32xbf16>
    %cst_16 = arith.constant dense<0.000000e+00> : vector<16x32xf32>
    %45 = tpu.matmul %43, %44, %cst_16 {dimension_numbers = #tpu.dot_dimension_numbers<[1], [0], [0], [1], [0, 0, 1, 1], [], []>} : vector<16x32xbf16>, vector<32x32xbf16>, vector<16x32xf32> -> vector<16x32xf32>
    %46 = vector.shape_cast %45 : vector<16x32xf32> to vector<2x8x32xf32>
    %47 = arith.truncf %46 : vector<2x8x32xf32> to vector<2x8x32xbf16>
    "tpu.trace_start"() <{level = 10 : i32, message = "bij,bjd->bid"}> : () -> ()
    %cst_17 = arith.constant dense<0.000000e+00> : vector<2x8x32xf32>
    %48 = tpu.matmul %38, %47, %cst_17 {dimension_numbers = #tpu.dot_dimension_numbers<[2], [1], [1], [2], [0, 0, 0, 1, 1, 2], [0], [0]>} : vector<2x8x8xbf16>, vector<2x8x32xbf16>, vector<2x8x32xf32> -> vector<2x8x32xf32>
    "tpu.trace_stop"() : () -> ()
    %c0_18 = arith.constant 0 : index
    %c0_19 = arith.constant 0 : index
    %49 = vector.load %arg6[%c0_18, %c0_19] : memref<1x32xf32, #tpu.memory_space<vmem>>, vector<1x32xf32>
    %50 = vector.shape_cast %49 : vector<1x32xf32> to vector<1x1x32xf32>
    %51 = vector.broadcast %50 : vector<1x1x32xf32> to vector<2x8x32xf32>
    %52 = arith.addf %48, %51 : vector<2x8x32xf32>
    %cst_20 = arith.constant 0.000000e+00 : f32
    %53 = vector.broadcast %cst_20 : f32 to vector<2x8x32xf32>
    %54 = arith.maximumf %52, %53 : vector<2x8x32xf32>
    %55 = arith.truncf %54 : vector<2x8x32xf32> to vector<2x8x32xbf16>
    %56 = arith.extf %55 : vector<2x8x32xbf16> to vector<2x8x32xf32>
    %57 = vector.broadcast %30 : vector<2x8x1xf32> to vector<2x8x32xf32>
    %58 = arith.mulf %57, %56 : vector<2x8x32xf32>
    %59 = vector.shape_cast %58 : vector<2x8x32xf32> to vector<16x32xf32>
    %60 = arith.truncf %59 : vector<16x32xf32> to vector<16x32xbf16>
    %c0_21 = arith.constant 0 : index
    %c0_22 = arith.constant 0 : index
    %61 = vector.load %arg7[%c0_21, %c0_22] : memref<32x32xbf16, #tpu.memory_space<vmem>>, vector<32x32xbf16>
    %cst_23 = arith.constant dense<0.000000e+00> : vector<16x32xf32>
    %62 = tpu.matmul %60, %61, %cst_23 {dimension_numbers = #tpu.dot_dimension_numbers<[1], [0], [0], [1], [0, 0, 1, 1], [], []>} : vector<16x32xbf16>, vector<32x32xbf16>, vector<16x32xf32> -> vector<16x32xf32>
    %63 = vector.shape_cast %62 : vector<16x32xf32> to vector<2x8x32xf32>
    %64 = arith.truncf %63 : vector<2x8x32xf32> to vector<2x8x32xbf16>
    "tpu.trace_start"() <{level = 10 : i32, message = "bij,bjd->bid"}> : () -> ()
    %cst_24 = arith.constant dense<0.000000e+00> : vector<2x8x32xf32>
    %65 = tpu.matmul %38, %64, %cst_24 {dimension_numbers = #tpu.dot_dimension_numbers<[2], [1], [1], [2], [0, 0, 0, 1, 1, 2], [0], [0]>} : vector<2x8x8xbf16>, vector<2x8x32xbf16>, vector<2x8x32xf32> -> vector<2x8x32xf32>
    "tpu.trace_stop"() : () -> ()
    %c0_25 = arith.constant 0 : index
    %c0_26 = arith.constant 0 : index
    %66 = vector.load %arg8[%c0_25, %c0_26] : memref<1x32xf32, #tpu.memory_space<vmem>>, vector<1x32xf32>
    %67 = vector.shape_cast %66 : vector<1x32xf32> to vector<1x1x32xf32>
    %68 = vector.broadcast %67 : vector<1x1x32xf32> to vector<2x8x32xf32>
    %69 = arith.addf %65, %68 : vector<2x8x32xf32>
    %cst_27 = arith.constant 0.000000e+00 : f32
    %70 = vector.broadcast %cst_27 : f32 to vector<2x8x32xf32>
    %71 = arith.maximumf %69, %70 : vector<2x8x32xf32>
    %72 = arith.truncf %71 : vector<2x8x32xf32> to vector<2x8x32xbf16>
    %73 = arith.extf %72 : vector<2x8x32xbf16> to vector<2x8x32xf32>
    %74 = vector.broadcast %30 : vector<2x8x1xf32> to vector<2x8x32xf32>
    %75 = arith.mulf %74, %73 : vector<2x8x32xf32>
    %76 = vector.shape_cast %75 : vector<2x8x32xf32> to vector<16x32xf32>
    %77 = arith.truncf %76 : vector<16x32xf32> to vector<16x32xbf16>
    %c0_28 = arith.constant 0 : index
    %c0_29 = arith.constant 0 : index
    %78 = vector.load %arg9[%c0_28, %c0_29] : memref<32x32xbf16, #tpu.memory_space<vmem>>, vector<32x32xbf16>
    %cst_30 = arith.constant dense<0.000000e+00> : vector<16x32xf32>
    %79 = tpu.matmul %77, %78, %cst_30 {dimension_numbers = #tpu.dot_dimension_numbers<[1], [0], [0], [1], [0, 0, 1, 1], [], []>} : vector<16x32xbf16>, vector<32x32xbf16>, vector<16x32xf32> -> vector<16x32xf32>
    %80 = vector.shape_cast %79 : vector<16x32xf32> to vector<2x8x32xf32>
    %81 = arith.truncf %80 : vector<2x8x32xf32> to vector<2x8x32xbf16>
    "tpu.trace_start"() <{level = 10 : i32, message = "bij,bjd->bid"}> : () -> ()
    %cst_31 = arith.constant dense<0.000000e+00> : vector<2x8x32xf32>
    %82 = tpu.matmul %39, %81, %cst_31 {dimension_numbers = #tpu.dot_dimension_numbers<[2], [1], [1], [2], [0, 0, 0, 1, 1, 2], [0], [0]>} : vector<2x8x8xbf16>, vector<2x8x32xbf16>, vector<2x8x32xf32> -> vector<2x8x32xf32>
    "tpu.trace_stop"() : () -> ()
    %c0_32 = arith.constant 0 : index
    %c0_33 = arith.constant 0 : index
    %83 = vector.load %arg10[%c0_32, %c0_33] : memref<1x32xf32, #tpu.memory_space<vmem>>, vector<1x32xf32>
    %84 = vector.shape_cast %83 : vector<1x32xf32> to vector<1x1x32xf32>
    %85 = vector.broadcast %84 : vector<1x1x32xf32> to vector<2x8x32xf32>
    %86 = arith.addf %82, %85 : vector<2x8x32xf32>
    %cst_34 = arith.constant 0.000000e+00 : f32
    %87 = vector.broadcast %cst_34 : f32 to vector<2x8x32xf32>
    %88 = arith.maximumf %86, %87 : vector<2x8x32xf32>
    %89 = arith.truncf %88 : vector<2x8x32xf32> to vector<2x8x32xbf16>
    %90 = arith.extf %89 : vector<2x8x32xbf16> to vector<2x8x32xf32>
    %91 = vector.broadcast %30 : vector<2x8x1xf32> to vector<2x8x32xf32>
    %92 = arith.mulf %91, %90 : vector<2x8x32xf32>
    %93 = vector.shape_cast %92 : vector<2x8x32xf32> to vector<16x32xf32>
    %94 = arith.truncf %93 : vector<16x32xf32> to vector<16x32xbf16>
    %c0_35 = arith.constant 0 : index
    %c0_36 = arith.constant 0 : index
    %95 = vector.load %arg11[%c0_35, %c0_36] : memref<32x32xbf16, #tpu.memory_space<vmem>>, vector<32x32xbf16>
    %cst_37 = arith.constant dense<0.000000e+00> : vector<16x32xf32>
    %96 = tpu.matmul %94, %95, %cst_37 {dimension_numbers = #tpu.dot_dimension_numbers<[1], [0], [0], [1], [0, 0, 1, 1], [], []>} : vector<16x32xbf16>, vector<32x32xbf16>, vector<16x32xf32> -> vector<16x32xf32>
    %97 = vector.shape_cast %96 : vector<16x32xf32> to vector<2x8x32xf32>
    %98 = arith.truncf %97 : vector<2x8x32xf32> to vector<2x8x32xbf16>
    "tpu.trace_start"() <{level = 10 : i32, message = "bij,bjd->bid"}> : () -> ()
    %cst_38 = arith.constant dense<0.000000e+00> : vector<2x8x32xf32>
    %99 = tpu.matmul %39, %98, %cst_38 {dimension_numbers = #tpu.dot_dimension_numbers<[2], [1], [1], [2], [0, 0, 0, 1, 1, 2], [0], [0]>} : vector<2x8x8xbf16>, vector<2x8x32xbf16>, vector<2x8x32xf32> -> vector<2x8x32xf32>
    "tpu.trace_stop"() : () -> ()
    %c0_39 = arith.constant 0 : index
    %c0_40 = arith.constant 0 : index
    %100 = vector.load %arg12[%c0_39, %c0_40] : memref<1x32xf32, #tpu.memory_space<vmem>>, vector<1x32xf32>
    %101 = vector.shape_cast %100 : vector<1x32xf32> to vector<1x1x32xf32>
    %102 = vector.broadcast %101 : vector<1x1x32xf32> to vector<2x8x32xf32>
    %103 = arith.addf %99, %102 : vector<2x8x32xf32>
    %cst_41 = arith.constant 0.000000e+00 : f32
    %104 = vector.broadcast %cst_41 : f32 to vector<2x8x32xf32>
    %105 = arith.maximumf %103, %104 : vector<2x8x32xf32>
    %106 = arith.truncf %105 : vector<2x8x32xf32> to vector<2x8x32xbf16>
    %107 = arith.extf %72 : vector<2x8x32xbf16> to vector<2x8x32xf32>
    %108 = arith.extf %106 : vector<2x8x32xbf16> to vector<2x8x32xf32>
    %cst_42 = arith.constant 2.000000e-01 : f32
    %109 = vector.broadcast %cst_42 : f32 to vector<2x8x32xf32>
    %110 = arith.mulf %109, %108 : vector<2x8x32xf32>
    %111 = arith.addf %107, %110 : vector<2x8x32xf32>
    %112 = vector.broadcast %37 : vector<2x8x1xf32> to vector<2x8x32xf32>
    %113 = arith.mulf %112, %111 : vector<2x8x32xf32>
    %cst_43 = arith.constant dense<0.000000e+00> : vector<2x32xf32>
    %114 = vector.multi_reduction <add>, %113, %cst_43 [1] : vector<2x8x32xf32> to vector<2x32xf32>
    %115 = vector.shape_cast %114 : vector<2x32xf32> to vector<2x1x32xf32>
    %116 = vector.broadcast %115 : vector<2x1x32xf32> to vector<2x8x32xf32>
    %117 = arith.mulf %116, %0 : vector<2x8x32xf32>
    %cst_44 = arith.constant dense<0.000000e+00> : vector<2x8xf32>
    %118 = vector.multi_reduction <add>, %117, %cst_44 [2] : vector<2x8x32xf32> to vector<2x8xf32>
    %cst_45 = arith.constant dense<0xFF800000> : vector<2xf32>
    %119 = vector.multi_reduction <maximumf>, %118, %cst_45 [1] : vector<2x8xf32> to vector<2xf32>
    %120 = vector.shape_cast %119 : vector<2xf32> to vector<2x1xf32>
    %121 = vector.broadcast %120 : vector<2x1xf32> to vector<2x8xf32>
    %122 = arith.subf %118, %121 : vector<2x8xf32>
    %123 = math.exp %122 : vector<2x8xf32>
    %cst_46 = arith.constant dense<0.000000e+00> : vector<2xf32>
    %124 = vector.multi_reduction <add>, %123, %cst_46 [1] : vector<2x8xf32> to vector<2xf32>
    %125 = vector.shape_cast %124 : vector<2xf32> to vector<2x1xf32>
    %126 = vector.broadcast %125 : vector<2x1xf32> to vector<2x8xf32>
    %127 = arith.divf %123, %126 : vector<2x8xf32>
    %128 = vector.shape_cast %127 : vector<2x8xf32> to vector<2x8x1xf32>
    %129 = vector.broadcast %128 : vector<2x8x1xf32> to vector<2x8x32xf32>
    %130 = arith.mulf %129, %0 : vector<2x8x32xf32>
    %cst_47 = arith.constant dense<0.000000e+00> : vector<2x32xf32>
    %131 = vector.multi_reduction <add>, %130, %cst_47 [1] : vector<2x8x32xf32> to vector<2x32xf32>
    %132 = vector.shape_cast %131 : vector<2x32xf32> to vector<2x1x32xf32>
    %c0_48 = arith.constant 0 : index
    %c0_49 = arith.constant 0 : index
    %c0_50 = arith.constant 0 : index
    %133 = vector.load %arg13[%c0_48, %c0_49, %c0_50] : memref<2x1x32xf32, #tpu.memory_space<vmem>>, vector<2x1x32xf32>
    tpu.vector_store %arg13[%c0_48, %c0_49, %c0_50], %132 {strides = array<i32>} : memref<2x1x32xf32, #tpu.memory_space<vmem>>, vector<2x1x32xf32>,
    return
  }
  func.func @transform_0(%arg0: i32) -> (i32, i32, i32) {
    %c0_i32 = arith.constant 0 : i32
    %c0_i32_0 = arith.constant 0 : i32
    %c0_i32_1 = arith.constant 0 : i32
    return %arg0, %c0_i32, %c0_i32_0 : i32, i32, i32
  }
  func.func @transform_1(%arg0: i32) -> (i32, i32, i32) {
    %c0_i32 = arith.constant 0 : i32
    %c0_i32_0 = arith.constant 0 : i32
    %c0_i32_1 = arith.constant 0 : i32
    return %arg0, %c0_i32, %c0_i32_0 : i32, i32, i32
  }
  func.func @transform_2(%arg0: i32) -> (i32, i32, i32) {
    %c0_i32 = arith.constant 0 : i32
    %c0_i32_0 = arith.constant 0 : i32
    %c0_i32_1 = arith.constant 0 : i32
    return %arg0, %c0_i32, %c0_i32_0 : i32, i32, i32
  }
  func.func @transform_3(%arg0: i32) -> (i32, i32, i32) {
    %c0_i32 = arith.constant 0 : i32
    %c0_i32_0 = arith.constant 0 : i32
    %c0_i32_1 = arith.constant 0 : i32
    return %arg0, %c0_i32, %c0_i32_0 : i32, i32, i32
  }
  func.func @transform_4(%arg0: i32) -> (i32, i32) {
    %c0_i32 = arith.constant 0 : i32
    %c0_i32_0 = arith.constant 0 : i32
    %c0_i32_1 = arith.constant 0 : i32
    return %c0_i32, %c0_i32_0 : i32, i32
  }
  func.func @transform_5(%arg0: i32) -> (i32, i32) {
    %c0_i32 = arith.constant 0 : i32
    %c0_i32_0 = arith.constant 0 : i32
    %c0_i32_1 = arith.constant 0 : i32
    return %c0_i32, %c0_i32_0 : i32, i32
  }
  func.func @transform_6(%arg0: i32) -> (i32, i32) {
    %c0_i32 = arith.constant 0 : i32
    %c0_i32_0 = arith.constant 0 : i32
    %c0_i32_1 = arith.constant 0 : i32
    return %c0_i32, %c0_i32_0 : i32, i32
  }
  func.func @transform_7(%arg0: i32) -> (i32, i32) {
    %c0_i32 = arith.constant 0 : i32
    %c0_i32_0 = arith.constant 0 : i32
    %c0_i32_1 = arith.constant 0 : i32
    return %c0_i32, %c0_i32_0 : i32, i32
  }
  func.func @transform_8(%arg0: i32) -> (i32, i32) {
    %c0_i32 = arith.constant 0 : i32
    %c0_i32_0 = arith.constant 0 : i32
    %c0_i32_1 = arith.constant 0 : i32
    return %c0_i32, %c0_i32_0 : i32, i32
  }
  func.func @transform_9(%arg0: i32) -> (i32, i32) {
    %c0_i32 = arith.constant 0 : i32
    %c0_i32_0 = arith.constant 0 : i32
    %c0_i32_1 = arith.constant 0 : i32
    return %c0_i32, %c0_i32_0 : i32, i32
  }
  func.func @transform_10(%arg0: i32) -> (i32, i32) {
    %c0_i32 = arith.constant 0 : i32
    %c0_i32_0 = arith.constant 0 : i32
    %c0_i32_1 = arith.constant 0 : i32
    return %c0_i32, %c0_i32_0 : i32, i32
  }
  func.func @transform_11(%arg0: i32) -> (i32, i32) {
    %c0_i32 = arith.constant 0 : i32
    %c0_i32_0 = arith.constant 0 : i32
    %c0_i32_1 = arith.constant 0 : i32
    return %c0_i32, %c0_i32_0 : i32, i32
  }
  func.func @transform_12(%arg0: i32) -> (i32, i32, i32) {
    %c0_i32 = arith.constant 0 : i32
    %c0_i32_0 = arith.constant 0 : i32
    %c0_i32_1 = arith.constant 0 : i32
    return %arg0, %c0_i32, %c0_i32_0 : i32, i32, i32
  }
}

</mosaic_0001>

<bundles_post_ra>
// kernel: tpu_custom_call.1
= control target key start
LH: loop header
LB: loop body
LE: loop exit
PB: predicated region body
PF: predicated region fallthrough
CT: control target
= control target key end

     0   :  { %17 = vsyncpa [#allocation3], 0  ;;  %s1831_s0 = inlined_call_operand.hbm [shape: f32[2,1,4], index: 0, kind: input, shape index: {}]   ;;  %s1832_s1 = inlined_call_operand.hbm [shape: f32[2,8,32], index: 1, kind: input, shape index: {}]   ;;  %s1833_s2 = inlined_call_operand.hbm [shape: bf16[2,8,8], index: 2, kind: input, shape index: {}]   ;;  %s1834_s3 = inlined_call_operand.hbm [shape: bf16[2,8,8], index: 3, kind: input, shape index: {}]   ;;  %s1835_s4 = inlined_call_operand.hbm [shape: bf16[32,32], index: 4, kind: input, shape index: {}]   ;;  %s1836_s5 = inlined_call_operand.vmem [shape: f32[1,32], index: 5, kind: input, shape index: {}]   ;;  %s1837_s6 = inlined_call_operand.vmem [shape: bf16[32,32], index: 6, kind: input, shape index: {}]   ;;  %s1838_s7 = inlined_call_operand.vmem [shape: f32[1,32], index: 7, kind: input, shape index: {}]   ;;  %s1839_s8 = inlined_call_operand.hbm [shape: bf16[32,32], index: 8, kind: input, shape index: {}]   ;;  %s1840_s9 = inlined_call_operand.hbm [shape: f32[1,32], index: 9, kind: input, shape index: {}]   ;;  %s1841_s10 = inlined_call_operand.vmem [shape: bf16[32,32], index: 10, kind: input, shape index: {}]   ;;  %s1842_s11 = inlined_call_operand.vmem [shape: f32[1,32], index: 11, kind: input, shape index: {}]   ;;  %s1843_s12 = inlined_call_operand.hbm [shape: f32[2,1,32], index: 12, kind: output, shape index: {}]  }
   0x1   :  { %18 = vsyncpa [#allocation6], 0 }
   0x2   :  { %19 = vsyncpa [#allocation9], 0 }
   0x3   :  { %20 = vsyncpa [#allocation12], 0 }
   0x4   :  { %21 = vsyncpa [#allocation4], 0  ;;  %s1438_s21 = smov [#allocation5]   ;;  %s1252_s25 = scalar_lea.hbm %s1832_s1, 256 }
   0x5   :  { %s39_s22 = sshll.u32 %s1438_s21, 4  ;;  %p1253_p0 = scmp.ne.s32.totalorder %s1832_s1, %s1252_s25  ;;  %s40_s22 = int_to_ptr.vmem [resolvable:$true] %s39_s22 }
   0x6   :  { %p1256_p1 = scmp.lt.u32.totalorder %s1252_s25, %s1832_s1 }
   0x8   :  { %p1258_p2 = pnand %p1256_p1, %p1253_p0 }
   0xa   :  { %1261 = shalt.err (!%p1258_p2)
}
   0xb   :  { %s1262_s30 = scalar_lea.vmem %s40_s22, 256  ;;  %p1267_p4 = scmp.lt.s32.totalorder %s40_s22, %s40_s22 }
   0xc   :  { %p1263_p3 = scmp.ne.s32.totalorder %s40_s22, %s1262_s30  ;;  %p1268_p5 = scmp.lt.s32.totalorder %s1262_s30, %s1262_s30 }
   0xe   :  { %p1269_p6 = por %p1268_p5, %p1267_p4 }
  0x10   :  { %p1270_p7 = pnand %p1269_p6, %p1263_p3 }
  0x12   :  { %1273 = shalt.err (!%p1270_p7)
}
  0x13   :  { %s1439_s13 = smov 128   ;;  %s1440_s14 = smov 8  }
  0x14   :  { %45 = dma.hbm_to_vmem [thread:$0]  %s1832_s1, 256, %s40_s22, [#allocation6], %s1439_s13, %s1439_s13, %s1440_s14  }
  0x15   :  { %s1441_s17 = smov [#allocation8]   ;;  %s1442_s19 = smov [#allocation11]  }
  0x16   :  { %s63_s18 = sshll.u32 %s1441_s17, 4  ;;  %s93_s20 = sshll.u32 %s1442_s19, 4  ;;  %s64_s18 = int_to_ptr.vmem [resolvable:$true] %s63_s18  ;;  %s94_s20 = int_to_ptr.vmem [resolvable:$true] %s93_s20 }
  0x17   :  { %s1274_s24 = scalar_lea.hbm %s1834_s3, 128 }
  0x18   :  { %p1275_p8 = scmp.ne.s32.totalorder %s1834_s3, %s1274_s24  ;;  %p1278_p9 = scmp.lt.u32.totalorder %s1274_s24, %s1834_s3 }
  0x1a   :  { %p1280_p10 = pnand %p1278_p9, %p1275_p8 }
  0x1c   :  { %1283 = shalt.err (!%p1280_p10)
}
  0x1d   :  { %s1284_s1 = scalar_lea.vmem %s64_s18, 128  ;;  %p1289_p12 = scmp.lt.s32.totalorder %s64_s18, %s64_s18 }
  0x1e   :  { %p1285_p11 = scmp.ne.s32.totalorder %s64_s18, %s1284_s1  ;;  %p1290_p13 = scmp.lt.s32.totalorder %s1284_s1, %s1284_s1 }
  0x20   :  { %p1291_p0 = por %p1290_p13, %p1289_p12 }
  0x22   :  { %p1292_p1 = pnand %p1291_p0, %p1285_p11 }
  0x24   :  { %1295 = shalt.err (!%p1292_p1)
}
  0x25   :  { %s1443_s22 = smov 64   ;;  %s1444_s29 = smov 4  }
  0x26   :  { %69 = dma.hbm_to_vmem [thread:$0]  %s1834_s3, 128, %s64_s18, [#allocation9], %s1443_s22, %s1443_s22, %s1444_s29  }
  0x27   :  { %s1296_s16 = scalar_lea.hbm %s1839_s8, 256 }
  0x28   :  { %p1297_p2 = scmp.ne.s32.totalorder %s1839_s8, %s1296_s16  ;;  %p1300_p3 = scmp.lt.u32.totalorder %s1296_s16, %s1839_s8 }
  0x2a   :  { %p1302_p4 = pnand %p1300_p3, %p1297_p2 }
  0x2c   :  { %1305 = shalt.err (!%p1302_p4)
}
  0x2d   :  { %s1306_s24 = scalar_lea.vmem %s94_s20, 256  ;;  %p1311_p6 = scmp.lt.s32.totalorder %s94_s20, %s94_s20 }
  0x2e   :  { %p1307_p5 = scmp.ne.s32.totalorder %s94_s20, %s1306_s24  ;;  %p1312_p7 = scmp.lt.s32.totalorder %s1306_s24, %s1306_s24 }
  0x30   :  { %p1313_p8 = por %p1312_p7, %p1311_p6 }
  0x32   :  { %p1314_p9 = pnand %p1313_p8, %p1307_p5 }
  0x34   :  { %1317 = shalt.err (!%p1314_p9)
}
  0x35   :  { %99 = dma.hbm_to_vmem [thread:$0]  %s1839_s8, 256, %s94_s20, [#allocation12], %s1443_s22, %s1443_s22, %s1444_s29  }
  0x36   :  { %s1445_s25 = smov [#allocation2]   ;;  %s1318_s1 = scalar_lea.hbm %s1831_s0, 32 }
  0x37   :  { %s27_s26 = sshll.u32 %s1445_s25, 4  ;;  %p1319_p10 = scmp.ne.s32.totalorder %s1831_s0, %s1318_s1  ;;  %s28_s26 = int_to_ptr.vmem [resolvable:$true] %s27_s26 }
  0x38   :  { %p1322_p11 = scmp.lt.u32.totalorder %s1318_s1, %s1831_s0 }
  0x3a   :  { %p1324_p12 = pnand %p1322_p11, %p1319_p10 }
  0x3c   :  { %1327 = shalt.err (!%p1324_p12)
}
  0x3d   :  { %s1328_s16 = scalar_lea.vmem %s28_s26, 32  ;;  %p1333_p0 = scmp.lt.s32.totalorder %s28_s26, %s28_s26 }
  0x3e   :  { %p1329_p13 = scmp.ne.s32.totalorder %s28_s26, %s1328_s16  ;;  %p1334_p1 = scmp.lt.s32.totalorder %s1328_s16, %s1328_s16 }
  0x40   :  { %p1335_p2 = por %p1334_p1, %p1333_p0 }
  0x42   :  { %p1336_p3 = pnand %p1335_p2, %p1329_p13 }
  0x44   :  { %1339 = shalt.err (!%p1336_p3)
}
  0x45   :  { %s1446_s8 = smov 16   ;;  %s1447_s20 = smov 1  }
  0x46   :  { %33 = dma.hbm_to_vmem [thread:$0]  %s1831_s0, 32, %s28_s26, [#allocation3], %s1446_s8, %s1446_s8, %s1447_s20  }
  0x47   :  { %s1448_s21 = smov [#allocation7]   ;;  %s1449_s24 = smov [#allocation10]  }
  0x48   :  { %s51_s23 = sshll.u32 %s1448_s21, 4  ;;  %s75_s3 = sshll.u32 %s1449_s24, 4  ;;  %s52_s23 = int_to_ptr.vmem [resolvable:$true] %s51_s23  ;;  %s1580_s3 = int_to_ptr.vmem [resolvable:$true] %s75_s3 }
  0x49   :  { %s1340_s27 = scalar_lea.hbm %s1833_s2, 128 }
  0x4a   :  { %p1341_p4 = scmp.ne.s32.totalorder %s1833_s2, %s1340_s27  ;;  %p1344_p5 = scmp.lt.u32.totalorder %s1340_s27, %s1833_s2 }
  0x4c   :  { %p1346_p6 = pnand %p1344_p5, %p1341_p4 }
  0x4e   :  { %1349 = shalt.err (!%p1346_p6)
}
  0x4f   :  { %s1350_s0 = scalar_lea.vmem %s52_s23, 128  ;;  %p1355_p8 = scmp.lt.s32.totalorder %s52_s23, %s52_s23 }
  0x50   :  { %p1351_p7 = scmp.ne.s32.totalorder %s52_s23, %s1350_s0  ;;  %p1356_p9 = scmp.lt.s32.totalorder %s1350_s0, %s1350_s0 }
  0x52   :  { %p1357_p10 = por %p1356_p9, %p1355_p8 }
  0x54   :  { %p1358_p11 = pnand %p1357_p10, %p1351_p7 }
  0x56   :  { %1361 = shalt.err (!%p1358_p11)
}
  0x57   :  { %57 = dma.hbm_to_vmem [thread:$0]  %s1833_s2, 128, %s52_s23, [#allocation6], %s1443_s22, %s1443_s22, %s1444_s29  }
  0x58   :  { %s1362_s17 = scalar_lea.hbm %s1835_s4, 256 }
  0x59   :  { %p1363_p12 = scmp.ne.s32.totalorder %s1835_s4, %s1362_s17  ;;  %p1366_p13 = scmp.lt.u32.totalorder %s1362_s17, %s1835_s4 }
  0x5b   :  { %p1368_p0 = pnand %p1366_p13, %p1363_p12 }
  0x5d   :  { %1371 = shalt.err (!%p1368_p0)
}
  0x5e   :  { %s1372_s25 = scalar_lea.vmem %s1580_s3, 256  ;;  %p1377_p2 = scmp.lt.s32.totalorder %s1580_s3, %s1580_s3 }
  0x5f   :  { %p1373_p1 = scmp.ne.s32.totalorder %s1580_s3, %s1372_s25  ;;  %p1378_p3 = scmp.lt.s32.totalorder %s1372_s25, %s1372_s25 }
  0x61   :  { %p1379_p4 = por %p1378_p3, %p1377_p2 }
  0x63   :  { %p1380_p5 = pnand %p1379_p4, %p1373_p1 }
  0x65   :  { %1383 = shalt.err (!%p1380_p5)
}
  0x66   :  { %81 = dma.hbm_to_vmem [thread:$0]  %s1835_s4, 256, %s1580_s3, [#allocation9], %s1443_s22, %s1443_s22, %s1444_s29  }
  0x67   :  { %s1450_s27 = smov [#allocation13]   ;;  %s1384_s13 = scalar_lea.hbm %s1840_s9, 16 }
  0x68   :  { %s106_s28 = sshll.u32 %s1450_s27, 4  ;;  %p1385_p6 = scmp.ne.s32.totalorder %s1840_s9, %s1384_s13  ;;  %s107_s28 = int_to_ptr.vmem [resolvable:$true] %s106_s28 }
  0x69   :  { %p1388_p7 = scmp.lt.u32.totalorder %s1384_s13, %s1840_s9 }
  0x6b   :  { %p1390_p8 = pnand %p1388_p7, %p1385_p6 }
  0x6d   :  { %1393 = shalt.err (!%p1390_p8)
}
  0x6e   :  { %s1394_s16 = scalar_lea.vmem %s107_s28, 16  ;;  %s1398_s4 = scalar_lea.vmem %s107_s28, 32 }
  0x6f   :  { %p1395_p9 = scmp.ne.s32.totalorder %s107_s28, %s1394_s16  ;;  %p1399_p10 = scmp.lt.s32.totalorder %s107_s28, %s107_s28 }
  0x70   :  { %p1400_p11 = scmp.lt.s32.totalorder %s1398_s4, %s1394_s16 }
  0x72   :  { %p1401_p12 = por %p1400_p11, %p1399_p10 }
  0x74   :  { %p1402_p13 = pnand %p1401_p12, %p1395_p9 }
  0x76   :  { %1405 = shalt.err (!%p1402_p13)
}
  0x77   :  { %109 = dma.hbm_to_vmem [thread:$0]  %s1840_s9, 16, %s107_s28, [#allocation12]  }
  0x78   :  { %1428 = dma.done.wait [#allocation3], 32  }
  0x79   :  { %1429 = vsyncadd [#allocation3], 4294967264 }
  0x7a   :  { %1430 = dma.done.wait [#allocation6], 384  }
  0x7b   :  { %1431 = vsyncadd [#allocation6], 4294966912 }
  0x7c   :  { %1432 = dma.done.wait [#allocation9], 384  }
  0x7d   :  { %1433 = vsyncadd [#allocation9], 4294966912 }
  0x7e   :  { %1434 = dma.done.wait [#allocation12], 272  }
  0x7f   :  { %1435 = vsyncadd [#allocation12], 4294967024  ;;  %v1629_v0 = vld [vmem:[#allocation2] ss:$0 sm:$0xff]  ;;  %v1631_v1 = vld [vmem:[#allocation2 + $0x1] ss:$0 sm:$0xff]  ;;  %v140_v2 = vlaneseq }
  0x80   :  { %s1451_s3 = smov 126   ;;  %s1452_s9 = smov 127   ;;  %v1454_v17 = vmov 0   ;;  %v1236_v34 = vld [vmem:[#allocation10] sm:$0xff]   ;;  %v1455_v35 = vmov 0.0   ;;  %v1237_v38 = vld [vmem:[#allocation10 + $0x8] sm:$0xff]  }
  0x81   :  { %169 = vrot.lane.b32.xlu0 %v1629_v0, %s1451_s3  ;;  %v1636_v3 = vshrl.u32 %v140_v2, 7  ;;  %s1453_s17 = smov 125   ;;  %1230 = vset.pattern.permute.xlu1 %v1454_v17  ;;  %vm1456_vm4 = vmmov 0   ;;  %v1689_v40 = vld [vmem:[#allocation5] sm:$0xff]  ;;  %v1691_v41 = vld [vmem:[#allocation5 + $0x8] sm:$0xff]  ;;  %vm262_vm8 = vcmask 261120  }
  0x82   :  { %1229 = vset.pattern.permute.xlu0 %v1454_v17  ;;  %1129 = vmatprep.subr.bf16.mxu0 %v1455_v35  ;;  %vm320_vm12 = vcmask 1043456   ;;  %v229_v58 = vld [vmem:[#allocation7] sm:$0xf]  ;;  %vm316_vm13 = vcmask 64512   ;;  %v230_v60 = vld [vmem:[#allocation7 + $0x4] sm:$0xf] }
  0x83   :  { %v1639_v4 = vcvt.s32.f32 %v1636_v3  ;;  %1130 = vmatpush3.bf16.msra.mxu0 %v1236_v34  ;;  %1137 = vmatprep.subr.bf16.mxu1 %v1455_v35  ;;  %v1238_v61 = vld [vmem:[%s1837_s6] sm:$0xff]   ;;  %v1239_v62 = vld [vmem:[%s1837_s6 + $0x8] sm:$0xff]   ;;  %vm964_vm14 = vcmask 1041409   ;;  %vm967_vm15 = vcmask 58368  }
  0x84   :  { %1131 = vmatprep.subr.bf16.mxu0 %v1455_v35  ;;  %1133 = vmatprep.mubr.msk.bf16.mxu0 %vm1456_vm4, %v1455_v35  ;;  %v1080_v63 = vld [vmem:[%s1836_s5] ss:$0 sm:$0xff] }
  0x85   :  { %171 = vrot.lane.b32.xlu0 %v1631_v1, %s1451_s3  ;;  %v167_v5 = vsub.f32 %v1639_v4, %v1629_v0  ;;  %v168_v7 = vsub.f32 %v1639_v4, %v1631_v1  ;;  %vm179_vm0 = vcmp.lt.f32.partialorder %v1639_v4, %v1629_v0  ;;  %vm180_vm1 = vcmp.lt.f32.partialorder %v1639_v4, %v1631_v1 }
  0x86   :  { %vm181_vm2 = vcmp.le.f32.partialorder %v1639_v4, %v1629_v0  ;;  %vm182_vm3 = vcmp.le.f32.partialorder %v1639_v4, %v1631_v1  ;;  %v155_v24 = vsub.f32 %v1629_v0, %v1639_v4  ;;  %v156_v27 = vsub.f32 %v1631_v1, %v1639_v4  ;;  %1139 = vmatprep.mubr.msk.bf16.mxu1 %vm1456_vm4, %v1455_v35 }
  0x87   :  { %v215_v18 = vsel %vm181_vm2, 1, %v1454_v17  ;;  %v216_v19 = vsel %vm182_vm3, 1, %v1454_v17  ;;  %1132 = vmatpush3.bf16.msra.mxu0 %v1237_v38  ;;  %vm214_vm5 = vcmp.ge.f32.partialorder %v1639_v4, %v1631_v1  ;;  %vm213_vm9 = vcmp.ge.f32.partialorder %v1639_v4, %v1629_v0 }
  0x88   :  { %1149 = vmatprep.subr.bf16.mxu0 %v1455_v35 }
  0xf3   :  { %v170_v6 = vpop.permute.xlu0 %169 }
  0xf4   :  { %v175_v8 = vmul.f32 %v170_v6, %v167_v5 }
  0xf6   :  { %v177_v9 = vsub.f32 1.0, %v175_v8 }
  0xf7   :  { %v172_v10 = vpop.permute.xlu0 %171 }
  0xf8   :  { %v176_v11 = vmul.f32 %v172_v10, %v168_v7  ;;  %185 = vrot.lane.b32.xlu1 %v177_v9, %s1447_s20 }
  0xfa   :  { %v178_v12 = vsub.f32 1.0, %v176_v11 }
  0xfc   :  { %187 = vrot.lane.b32.xlu1 %v178_v12, %s1447_s20 }
 0x16a   :  { %v186_v13 = vpop.permute.xlu1 %185 }
 0x16b   :  { %v191_v14 = vsel %vm179_vm0, %v186_v13, 0.0 }
 0x16c   :  { %195 = vrot.lane.b32.xlu0 %v191_v14, %s1452_s9 }
 0x16e   :  { %v188_v15 = vpop.permute.xlu1 %187 }
 0x16f   :  { %v192_v16 = vsel %vm180_vm1, %v188_v15, 0.0 }
 0x170   :  { %197 = vrot.lane.b32.xlu1 %v192_v16, %s1452_s9  ;;  %157 = vrot.lane.b32.xlu0 %v1629_v0, %s1453_s17 }
 0x174   :  { %159 = vrot.lane.b32.xlu1 %v1631_v1, %s1453_s17 }
 0x1de   :  { %v196_v20 = vpop.permute.xlu0 %195 }
 0x1df   :  { %v201_v21 = vsel %vm181_vm2, 0.0, %v196_v20 }
 0x1e0   :  { %205 = vrot.lane.b32.xlu0 %v201_v21, %s1452_s9 }
 0x1e2   :  { %v198_v22 = vpop.permute.xlu1 %197  ;;  %v158_v25 = vpop.permute.xlu0 %157 }
 0x1e3   :  { %v202_v23 = vsel %vm182_vm3, 0.0, %v198_v22  ;;  %v163_v26 = vmul.f32 %v158_v25, %v155_v24 }
 0x1e4   :  { %207 = vrot.lane.b32.xlu1 %v202_v23, %s1452_s9 }
 0x1e5   :  { %v165_v29 = vsub.f32 1.0, %v163_v26 }
 0x1e6   :  { %v160_v28 = vpop.permute.xlu1 %159 }
 0x1e7   :  { %v164_v30 = vmul.f32 %v160_v28, %v156_v27 }
 0x1e9   :  { %v166_v32 = vsub.f32 1.0, %v164_v30  ;;  %v1241_v30 = vld [vmem:[#allocation11 + $0x8] sm:$0xff]  }
 0x252   :  { %v206_v31 = vpop.permute.xlu0 %205 }
 0x253   :  { %v211_v33 = vsel %vm179_vm0, %v165_v29, %v206_v31  ;;  %v1240_v29 = vld [vmem:[#allocation11] sm:$0xff]   ;;  %v1086_v31 = vld [vmem:[%s1838_s7] ss:$0 sm:$0xff]  ;;  %vm1050_vm0 = vcmask 253952  }
 0x254   :  { %235 = vperm.xlu0 %1229, %v211_v33  }
 0x256   :  { %v208_v36 = vpop.permute.xlu1 %207 }
 0x257   :  { %v212_v37 = vsel %vm180_vm1, %v166_v32, %v208_v36 }
 0x258   :  { %240 = vperm.xlu1 %1230, %v212_v37   ;;  %219 = vrot.lane.b32.xlu0 %v216_v19, %s1452_s9 }
 0x25c   :  { %217 = vrot.lane.b32.xlu1 %v215_v18, %s1452_s9 }
 0x2d3   :  { %v1687_v39 = vpop.permute.xlu0 %235 }
 0x2d4   :  { %v243_v44 = vmul.f32 %v1687_v39, %v1689_v40 }
 0x2d7   :  { %v1695_v42 = vpop.permute.xlu1 %240  ;;  %v220_v43 = vpop.permute.xlu0 %219 }
 0x2d8   :  { %v244_v45 = vmul.f32 %v1695_v42, %v1691_v41  ;;  %vm222_vm6 = vcmp.ne.s32.totalorder %v220_v43, 0 }
 0x2d9   :  { %vm224_vm7 = vmand %vm214_vm5, %vm222_vm6 }
 0x2da   :  { %v245_v46 = vpack.c.bf16 %v244_v45, %v243_v44  ;;  %v1076_v48 = vsel %vm224_vm7, 1.0, %v1455_v35 }
 0x2db   :  { %v218_v47 = vpop.permute.xlu1 %217 }
 0x2dc   :  { %vm221_vm10 = vcmp.ne.s32.totalorder %v218_v47, 0  ;;  %1134 = vmatmul.mubr.msk.bf16.vlgmr.msra.gmra.mrb[0].mxu0 %vm262_vm8, %v245_v46 }
 0x2dd   :  { %vm223_vm11 = vmand %vm213_vm9, %vm221_vm10  ;;  %1153 = vmatprep.mubr.msk.bf16.mxu0 %vm1456_vm4, %v1455_v35  ;;  %1150 = vmatpush3.bf16.msra.mxu0 %v1238_v61 }
 0x2de   :  { %v1075_v49 = vsel %vm223_vm11, 1.0, %v1455_v35  ;;  %1151 = vmatprep.subr.bf16.mxu0 %v1455_v35 }
 0x2df   :  { %v1231_v50 = vpack.i.bf16 %v1076_v48, %v1075_v49 }
 0x2e1   :  { %1232 = vperm.xlu1 %1230, %v1231_v50   ;;  %1152 = vmatpush3.bf16.msra.mxu0 %v1239_v62 }
 0x2e2   :  { %1163 = vmatprep.subr.bf16.mxu0 %v1455_v35 }
 0x3af   :  { %v300_v51 = vpop.f32.mrb[0].mxu0 }
 0x3b0   :  { %v307_v52 = vpack.c.bf16 %v300_v51, %v300_v51  ;;  %v1135_v53 = vpop.f32.mrb[1].mxu0 }
 0x3b1   :  { %v303_v54 = vpop.f32.mrb[2].mxu0 }
 0x3b2   :  { %v308_v55 = vpack.c.bf16 %v303_v54, %v303_v54  ;;  %v1136_v56 = vpop.f32.mrb[3].mxu0  ;;  %v322_v57 = vsel %vm320_vm12, %v307_v52, 0 }
 0x3b3   :  { %1138 = vmatpush3.bf16.msra.mxu1 %v322_v57 }
 0x3b4   :  { %1143 = vmatprep.subr.bf16.mxu1 %v1455_v35  ;;  %v368_v59 = vsel %vm320_vm12, %v308_v55, 0 }
 0x3b6   :  { %1140 = vmatmul.mubr.msk.bf16.vlgmr.msra.gmra.mrb[0].mxu1 %vm316_vm13, %v229_v58 }
 0x3b7   :  { %1144 = vmatpush3.bf16.msra.mxu1 %v368_v59  ;;  %1145 = vmatprep.mubr.msk.bf16.mxu1 %vm1456_vm4, %v1455_v35 }
 0x3b8   :  { %1157 = vmatprep.subr.bf16.mxu1 %v1455_v35 }
 0x3be   :  { %1146 = vmatmul.mubr.msk.bf16.vlgmr.msra.gmra.mrb[4].mxu1 %vm316_vm13, %v230_v60 }
 0x3bf   :  { %1159 = vmatprep.mubr.msk.bf16.mxu1 %vm1456_vm4, %v1455_v35 }
 0x489   :  { %v358_v0 = vpop.f32.mrb[0].mxu1 }
 0x48a   :  { %v359_v1 = vadd.f32 %v1080_v63, %v358_v0  ;;  %v1141_v4 = vpop.f32.mrb[1].mxu1 }
 0x48b   :  { %v361_v5 = vpop.f32.mrb[2].mxu1  ;;  %v1242_v4 = vld [vmem:[%s1841_s10] sm:$0xff]  }
 0x48c   :  { %v1142_v6 = vpop.f32.mrb[3].mxu1  ;;  %v410_v7 = vmax.f32 %v359_v1, 0.0  ;;  %v232_v1 = vld [vmem:[#allocation8 + $0x4] sm:$0xf]  ;;  %v1243_v5 = vld [vmem:[%s1841_s10 + $0x8] sm:$0xff]  }
 0x48d   :  { %v1092_v6 = vld [vmem:[#allocation13] ss:$0 sm:$0xff] }
 0x48e   :  { %v412_v9 = vpack.c.bf16 %v410_v7, %v410_v7 }
 0x490   :  { %v414_v15 = vunpack.c.l.bf16 %v412_v9 }
 0x491   :  { %v404_v8 = vpop.f32.mrb[4].mxu1 }
 0x492   :  { %v405_v10 = vadd.f32 %v1080_v63, %v404_v8  ;;  %v1147_v11 = vpop.f32.mrb[5].mxu1  ;;  %v416_v18 = vmul.f32 %v414_v15, %v1687_v39  ;;  %v231_v63 = vld [vmem:[#allocation8] sm:$0xf] }
 0x493   :  { %v407_v12 = vpop.f32.mrb[6].mxu1 }
 0x494   :  { %v411_v13 = vmax.f32 %v405_v10, 0.0  ;;  %v1148_v14 = vpop.f32.mrb[7].mxu1 }
 0x496   :  { %v413_v16 = vpack.c.bf16 %v411_v13, %v411_v13 }
 0x498   :  { %v415_v17 = vunpack.c.l.bf16 %v413_v16 }
 0x49a   :  { %v417_v19 = vmul.f32 %v415_v17, %v1695_v42 }
 0x49c   :  { %v418_v20 = vpack.c.bf16 %v417_v19, %v416_v18 }
 0x49e   :  { %1154 = vmatmul.mubr.msk.bf16.vlgmr.msra.gmra.mrb[4].mxu0 %vm262_vm8, %v418_v20 }
 0x49f   :  { %1165 = vmatprep.mubr.msk.bf16.mxu0 %vm1456_vm4, %v1455_v35 }
 0x571   :  { %v472_v21 = vpop.f32.mrb[4].mxu0 }
 0x572   :  { %v479_v22 = vpack.c.bf16 %v472_v21, %v472_v21  ;;  %v1155_v23 = vpop.f32.mrb[5].mxu0 }
 0x573   :  { %v475_v24 = vpop.f32.mrb[6].mxu0 }
 0x574   :  { %v489_v25 = vsel %vm320_vm12, %v479_v22, 0  ;;  %v480_v26 = vpack.c.bf16 %v475_v24, %v475_v24  ;;  %v1156_v27 = vpop.f32.mrb[7].mxu0 }
 0x575   :  { %1158 = vmatpush3.bf16.msra.mxu1 %v489_v25 }
 0x576   :  { %v532_v28 = vsel %vm320_vm12, %v480_v26, 0  ;;  %1169 = vmatprep.subr.bf16.mxu1 %v1455_v35 }
 0x577   :  { %1164 = vmatpush3.bf16.msra.mxu0 %v532_v28 }
 0x578   :  { %1160 = vmatmul.mubr.msk.bf16.vlgmr.msra.gmra.mrb[8].mxu1 %vm316_vm13, %v229_v58  ;;  %1177 = vmatprep.subr.bf16.mxu0 %v1455_v35 }
 0x579   :  { %1173 = vmatprep.mubr.msk.bf16.mxu1 %vm1456_vm4, %v1455_v35  ;;  %1170 = vmatpush3.bf16.msra.mxu1 %v1240_v29 }
 0x57a   :  { %1166 = vmatmul.mubr.msk.bf16.vlgmr.msra.gmra.mrb[8].mxu0 %vm316_vm13, %v230_v60  ;;  %1171 = vmatprep.subr.bf16.mxu1 %v1455_v35 }
 0x57b   :  { %1179 = vmatprep.mubr.msk.bf16.mxu0 %vm1456_vm4, %v1455_v35 }
 0x57d   :  { %1172 = vmatpush3.bf16.msra.mxu1 %v1241_v30 }
 0x57e   :  { %1183 = vmatprep.subr.bf16.mxu1 %v1455_v35 }
 0x64b   :  { %v525_v32 = vpop.f32.mrb[8].mxu1 }
 0x64c   :  { %v526_v33 = vadd.f32 %v1086_v31, %v525_v32  ;;  %v1161_v34 = vpop.f32.mrb[9].mxu1 }
 0x64d   :  { %v528_v36 = vpop.f32.mrb[10].mxu1  ;;  %v568_v37 = vpop.f32.mrb[8].mxu0 }
 0x64e   :  { %v574_v38 = vmax.f32 %v526_v33, 0.0  ;;  %v569_v43 = vadd.f32 %v1086_v31, %v568_v37  ;;  %v1162_v44 = vpop.f32.mrb[11].mxu1  ;;  %v1167_v45 = vpop.f32.mrb[9].mxu0 }
 0x64f   :  { %v571_v46 = vpop.f32.mrb[10].mxu0 }
 0x650   :  { %v1749_v47 = vpack.c.bf16 %v574_v38, %v574_v38  ;;  %v575_v48 = vmax.f32 %v569_v43, 0.0  ;;  %v1168_v49 = vpop.f32.mrb[11].mxu0 }
 0x652   :  { %v578_v50 = vunpack.c.l.bf16 %v1749_v47  ;;  %v1752_v51 = vpack.c.bf16 %v575_v48, %v575_v48 }
 0x654   :  { %v579_v52 = vunpack.c.l.bf16 %v1752_v51  ;;  %v580_v53 = vmul.f32 %v578_v50, %v1687_v39 }
 0x656   :  { %v581_v54 = vmul.f32 %v579_v52, %v1695_v42 }
 0x658   :  { %v582_v55 = vpack.c.bf16 %v581_v54, %v580_v53 }
 0x65a   :  { %1174 = vmatmul.mubr.msk.bf16.vlgmr.msra.gmra.mrb[12].mxu1 %vm262_vm8, %v582_v55 }
 0x65b   :  { %1185 = vmatprep.mubr.msk.bf16.mxu1 %vm1456_vm4, %v1455_v35 }
 0x72d   :  { %v636_v56 = vpop.f32.mrb[12].mxu1 }
 0x72e   :  { %v643_v57 = vpack.c.bf16 %v636_v56, %v636_v56  ;;  %v1175_v58 = vpop.f32.mrb[13].mxu1  ;;  %v1233_v56 = vpop.permute.xlu1 %1232 }
 0x72f   :  { %v639_v59 = vpop.f32.mrb[14].mxu1 }
 0x730   :  { %v656_v60 = vsel %vm320_vm12, %v643_v57, 0  ;;  %v644_v61 = vpack.c.bf16 %v639_v59, %v639_v59  ;;  %v1176_v62 = vpop.f32.mrb[15].mxu1  ;;  %v1234_v59 = vunpack.i.l.bf16 %v1233_v56 }
 0x731   :  { %1178 = vmatpush3.bf16.msra.mxu0 %v656_v60  ;;  %v1235_v62 = vunpack.i.h.bf16 %v1233_v56 }
 0x732   :  { %v702_v0 = vsel %vm320_vm12, %v644_v61, 0  ;;  %1189 = vmatprep.subr.bf16.mxu0 %v1455_v35 }
 0x733   :  { %1184 = vmatpush3.bf16.msra.mxu1 %v702_v0 }
 0x734   :  { %1180 = vmatmul.mubr.msk.bf16.vlgmr.msra.gmra.mrb[12].mxu0 %vm316_vm13, %v231_v63  ;;  %1197 = vmatprep.subr.bf16.mxu1 %v1455_v35 }
 0x735   :  { %1193 = vmatprep.mubr.msk.bf16.mxu0 %vm1456_vm4, %v1455_v35  ;;  %1190 = vmatpush3.bf16.msra.mxu0 %v1242_v4 }
 0x736   :  { %1186 = vmatmul.mubr.msk.bf16.vlgmr.msra.gmra.mrb[16].mxu1 %vm316_vm13, %v232_v1  ;;  %1191 = vmatprep.subr.bf16.mxu0 %v1455_v35 }
 0x737   :  { %1199 = vmatprep.mubr.msk.bf16.mxu1 %vm1456_vm4, %v1455_v35 }
 0x739   :  { %1192 = vmatpush3.bf16.msra.mxu0 %v1243_v5 }
 0x73a   :  { %1203 = vmatprep.subr.bf16.mxu0 %v1455_v35 }
 0x807   :  { %v692_v7 = vpop.f32.mrb[12].mxu0 }
 0x808   :  { %v693_v8 = vadd.f32 %v1092_v6, %v692_v7  ;;  %v1181_v9 = vpop.f32.mrb[13].mxu0 }
 0x809   :  { %v695_v10 = vpop.f32.mrb[14].mxu0  ;;  %v738_v11 = vpop.f32.mrb[16].mxu1 }
 0x80a   :  { %v744_v12 = vmax.f32 %v693_v8, 0.0  ;;  %v739_v13 = vadd.f32 %v1092_v6, %v738_v11  ;;  %v1182_v14 = vpop.f32.mrb[15].mxu0  ;;  %v1187_v15 = vpop.f32.mrb[17].mxu1 }
 0x80b   :  { %v741_v16 = vpop.f32.mrb[18].mxu1 }
 0x80c   :  { %v746_v17 = vpack.c.bf16 %v744_v12, %v744_v12  ;;  %v745_v18 = vmax.f32 %v739_v13, 0.0  ;;  %v1188_v19 = vpop.f32.mrb[19].mxu1 }
 0x80e   :  { %v748_v20 = vunpack.c.l.bf16 %v746_v17  ;;  %v747_v21 = vpack.c.bf16 %v745_v18, %v745_v18  ;;  %v955_v18 = vand.u32 127, %v140_v2 }
 0x810   :  { %v749_v22 = vunpack.c.l.bf16 %v747_v21  ;;  %v750_v23 = vmul.f32 %v748_v20, %v1687_v39  ;;  %v958_v19 = vsub.s32 %v955_v18, %v1636_v3 }
 0x812   :  { %v751_v24 = vmul.f32 %v749_v22, %v1695_v42 }
 0x814   :  { %v752_v25 = vpack.c.bf16 %v751_v24, %v750_v23 }
 0x816   :  { %1194 = vmatmul.mubr.msk.bf16.vlgmr.msra.gmra.mrb[16].mxu0 %vm262_vm8, %v752_v25 }
 0x817   :  { %1205 = vmatprep.mubr.msk.bf16.mxu0 %vm1456_vm4, %v1455_v35  ;;  %v1098_v35 = vld [vmem:[%s1842_s11] ss:$0 sm:$0xff]  ;;  %s1457_s11 = smov [#allocation14]  }
 0x818   :  { %s1058_s30 = sshll.u32 %s1457_s11, 4  ;;  %s1059_s30 = int_to_ptr.vmem [resolvable:$true] %s1058_s30 }
 0x819   :  { %s1406_s13 = scalar_lea.vmem %s1059_s30, 32  ;;  %p1411_p1 = scmp.lt.s32.totalorder %s1059_s30, %s1059_s30 }
 0x81a   :  { %p1407_p0 = scmp.ne.s32.totalorder %s1059_s30, %s1406_s13  ;;  %p1412_p2 = scmp.lt.s32.totalorder %s1406_s13, %s1406_s13 }
 0x81c   :  { %p1413_p3 = por %p1412_p2, %p1411_p1 }
 0x81e   :  { %p1414_p4 = pnand %p1413_p3, %p1407_p0 }
 0x8e9   :  { %v806_v26 = vpop.f32.mrb[16].mxu0 }
 0x8ea   :  { %v813_v27 = vpack.c.bf16 %v806_v26, %v806_v26  ;;  %v1195_v28 = vpop.f32.mrb[17].mxu0  ;;  %v974_v26 = vsub.s32 0, %v1636_v3 }
 0x8eb   :  { %v809_v29 = vpop.f32.mrb[18].mxu0 }
 0x8ec   :  { %v823_v30 = vsel %vm320_vm12, %v813_v27, 0  ;;  %v814_v31 = vpack.c.bf16 %v809_v29, %v809_v29  ;;  %v1196_v32 = vpop.f32.mrb[19].mxu0  ;;  %v978_v27 = vsub.s32 1, %v1636_v3 }
 0x8ed   :  { %1198 = vmatpush3.bf16.msra.mxu1 %v823_v30 }
 0x8ee   :  { %v866_v33 = vsel %vm320_vm12, %v814_v31, 0 }
 0x8ef   :  { %1204 = vmatpush3.bf16.msra.mxu0 %v866_v33 }
 0x8f0   :  { %1200 = vmatmul.mubr.msk.bf16.vlgmr.msra.gmra.mrb[20].mxu1 %vm316_vm13, %v231_v63 }
 0x8f2   :  { %1206 = vmatmul.mubr.msk.bf16.vlgmr.msra.gmra.mrb[20].mxu0 %vm316_vm13, %v232_v1 }
 0x9c3   :  { %v859_v39 = vpop.f32.mrb[20].mxu1 }
 0x9c4   :  { %v860_v42 = vadd.f32 %v1098_v35, %v859_v39  ;;  %v1201_v34 = vpop.f32.mrb[21].mxu1 }
 0x9c5   :  { %v902_v36 = vpop.f32.mrb[20].mxu0  ;;  %v862_v37 = vpop.f32.mrb[22].mxu1 }
 0x9c6   :  { %v908_v38 = vmax.f32 %v860_v42, 0.0  ;;  %v903_v43 = vadd.f32 %v1098_v35, %v902_v36  ;;  %v1207_v44 = vpop.f32.mrb[21].mxu0  ;;  %v1202_v45 = vpop.f32.mrb[23].mxu1 }
 0x9c7   :  { %v905_v46 = vpop.f32.mrb[22].mxu0 }
 0x9c8   :  { %v910_v48 = vpack.c.bf16 %v908_v38, %v908_v38  ;;  %v909_v49 = vmax.f32 %v903_v43, 0.0  ;;  %v1208_v53 = vpop.f32.mrb[23].mxu0 }
 0x9ca   :  { %v912_v54 = vunpack.c.l.bf16 %v910_v48  ;;  %v911_v55 = vpack.c.bf16 %v909_v49, %v909_v49 }
 0x9cc   :  { %v914_v57 = vmul.f32 0.2, %v912_v54  ;;  %v913_v58 = vunpack.c.l.bf16 %v911_v55 }
 0x9ce   :  { %v916_v60 = vadd.f32 %v914_v57, %v578_v50  ;;  %v915_v61 = vmul.f32 0.2, %v913_v58 }
 0x9d0   :  { %v928_v63 = vmul.f32 %v1234_v59, %v916_v60  ;;  %v917_v0 = vadd.f32 %v915_v61, %v579_v52 }
 0x9d2   :  { %v930_v1 = vsel %vm262_vm8, %v928_v63, 0.0  ;;  %v929_v4 = vmul.f32 %v1235_v62, %v917_v0 }
 0x9d3   :  { %v931_v5 = vrot.slane %v930_v1, 4 }
 0x9d4   :  { %v937_v6 = vsel %vm262_vm8, %v929_v4, 0.0 }
 0x9d5   :  { %v938_v7 = vrot.slane %v937_v6, 4  ;;  %v932_v8 = vadd.f32 %v931_v5, %v930_v1 }
 0x9d7   :  { %v933_v9 = vrot.slane %v932_v8, 2  ;;  %v939_v10 = vadd.f32 %v938_v7, %v937_v6 }
 0x9d9   :  { %v934_v11 = vadd.f32 %v933_v9, %v932_v8  ;;  %v940_v12 = vrot.slane %v939_v10, 2 }
 0x9db   :  { %v935_v47 = vrot.slane %v934_v11, 1  ;;  %v941_v50 = vadd.f32 %v940_v12, %v939_v10 }
 0x9dd   :  { %v936_v13 = vadd.f32 %v935_v47, %v934_v11  ;;  %v942_v14 = vrot.slane %v941_v50, 1 }
 0x9df   :  { %v944_v15 = vmul.f32 %v936_v13, %v1689_v40  ;;  %v943_v51 = vadd.f32 %v942_v14, %v941_v50 }
 0x9e1   :  { %v946_v52 = vsel %vm262_vm8, %v944_v15, 0.0  ;;  %v945_v16 = vmul.f32 %v943_v51, %v1691_v41 }
 0x9e2   :  { %947 = vadd.xlane.f32.xlu0 %v946_v52 }
 0x9e3   :  { %v949_v17 = vsel %vm262_vm8, %v945_v16, 0.0 }
 0x9e4   :  { %950 = vadd.xlane.f32.xlu1 %v949_v17 }
 0xa6f   :  { %v948_v20 = vpop.xlane.xlu0 %947 }
 0xa70   :  { %v959_v22 = vrot.slane %v948_v20, %v958_v19 }
 0xa71   :  { %v951_v21 = vpop.xlane.xlu1 %950 }
 0xa72   :  { %v963_v23 = vrot.slane %v951_v21, %v958_v19 }
 0xa74   :  { %v965_v24 = vsel %vm964_vm14, %v963_v23, %v959_v22 }
 0xa75   :  { %v968_v25 = vsel %vm967_vm15, %v965_v24, -inf }
 0xa76   :  { %969 = vmax.xlane.f32.xlu0 %v968_v25 }
 0xb03   :  { %v970_v28 = vpop.xlane.xlu0 %969 }
 0xb04   :  { %v975_v29 = vrot.slane %v970_v28, %v974_v26  ;;  %v979_v2 = vrot.slane %v970_v28, %v978_v27 }
 0xb06   :  { %v982_v30 = vsub.f32 %v948_v20, %v975_v29  ;;  %v983_v31 = vsub.f32 %v951_v21, %v979_v2 }
 0xb08   :  { %v984_v32 = vmul.f32 1.442695, %v982_v30  ;;  %v986_v33 = vmul.f32 1.442695, %v983_v31 }
 0xb0a   :  { %1244 = vpow2.f32 %v984_v32 }
 0xb0b   :  { %1246 = vpow2.f32 %v986_v33 }
 0xb14   :  { %v1245_v35 = vpop.eup %1244 }
 0xb15   :  { %v1247_v39 = vpop.eup %1246  ;;  %991 = vperm.xlu0 %1229, %v1245_v35  }
 0xb16   :  { %994 = vperm.xlu1 %1230, %v1247_v39  }
 0xb94   :  { %v992_v42 = vpop.permute.xlu0 %991 }
 0xb95   :  { %v995_v34 = vpop.permute.xlu1 %994  ;;  %v999_v36 = vrot.slane %v992_v42, %v958_v19 }
 0xb96   :  { %v1003_v37 = vrot.slane %v995_v34, %v958_v19 }
 0xb98   :  { %v1004_v38 = vsel %vm964_vm14, %v1003_v37, %v999_v36 }
 0xb99   :  { %v1006_v3 = vsel %vm967_vm15, %v1004_v38, 0.0 }
 0xb9a   :  { %1007 = vadd.xlane.f32.xlu1 %v1006_v3 }
 0xc27   :  { %v1008_v43 = vpop.xlane.xlu1 %1007 }
 0xc28   :  { %v1013_v44 = vrot.slane %v1008_v43, %v974_v26  ;;  %v1017_v45 = vrot.slane %v1008_v43, %v978_v27 }
 0xc2a   :  { %1248 = vrcp.f32 %v1013_v44 }
 0xc2b   :  { %1250 = vrcp.f32 %v1017_v45 }
 0xc34   :  { %v1249_v46 = vpop.eup %1248 }
 0xc35   :  { %v1021_v48 = vmul.f32 %v1249_v46, %v1245_v35  ;;  %v1251_v49 = vpop.eup %1250 }
 0xc36   :  { %v1023_v53 = vmul.f32 %v1251_v49, %v1247_v39 }
 0xc37   :  { %1026 = vperm.xlu0 %1229, %v1021_v48  }
 0xc3b   :  { %1031 = vperm.xlu0 %1229, %v1023_v53  }
 0xcb6   :  { %v1027_v54 = vpop.permute.xlu0 %1026 }
 0xcb7   :  { %v1034_v55 = vmul.f32 %v1027_v54, %v1689_v40 }
 0xcb9   :  { %v1036_v56 = vsel %vm262_vm8, %v1034_v55, 0.0 }
 0xcba   :  { %v1037_v57 = vrot.slane %v1036_v56, 4  ;;  %v1032_v58 = vpop.permute.xlu0 %1031 }
 0xcbb   :  { %v1035_v59 = vmul.f32 %v1032_v58, %v1691_v41 }
 0xcbc   :  { %v1038_v60 = vadd.f32 %v1037_v57, %v1036_v56 }
 0xcbd   :  { %v1043_v61 = vsel %vm262_vm8, %v1035_v59, 0.0 }
 0xcbe   :  { %v1039_v62 = vrot.slane %v1038_v60, 2  ;;  %v1044_v63 = vrot.slane %v1043_v61, 4 }
 0xcc0   :  { %v1040_v0 = vadd.f32 %v1039_v62, %v1038_v60  ;;  %v1045_v1 = vadd.f32 %v1044_v63, %v1043_v61 }
 0xcc2   :  { %v1041_v4 = vrot.slane %v1040_v0, 1  ;;  %v1046_v5 = vrot.slane %v1045_v1, 2 }
 0xcc4   :  { %v1042_v6 = vadd.f32 %v1041_v4, %v1040_v0  ;;  %v1047_v7 = vadd.f32 %v1046_v5, %v1045_v1 }
 0xcc6   :  { %v1048_v40 = vrot.slane %v1047_v7, 1  ;;  %1051 = vst.msk [vmem:[#allocation14] sm:$0x1] %vm1050_vm0, %v1042_v6 }
 0xcc8   :  { %v1049_v8 = vadd.f32 %v1048_v40, %v1047_v7 }
 0xcca   :  { %1052 = vst.msk [vmem:[#allocation14 + $0x1] sm:$0x1] %vm1050_vm0, %v1049_v8 }
 0xccb   :  { %1417 = shalt.err (!%p1414_p4)
}
 0xccc   :  { %s1418_s14 = scalar_lea.hbm %s1843_s12, 32 }
 0xccd   :  { %p1419_p5 = scmp.ne.s32.totalorder %s1843_s12, %s1418_s14  ;;  %p1422_p6 = scmp.lt.u32.totalorder %s1418_s14, %s1843_s12 }
 0xccf   :  { %p1424_p7 = pnand %p1422_p6, %p1419_p5 }
 0xcd1   :  { %1427 = shalt.err (!%p1424_p7)
}
 0xcd2   :  { %1064 = dma.vmem_to_hbm [thread:$0]  %s1059_s30, 32, %s1843_s12, [#allocation4], %s1446_s8, %s1446_s8, %s1447_s20  }
 0xcd3   :  { %1436 = dma.done.wait [#allocation4], 32  }
 0xcd4   :  { %1437 = vsyncadd [#allocation4], 4294967264 }
 0xcd5   :  { %1068 = vsyncpa [#allocation3], 1 }
 0xcd6   :  { %1069 = vsyncpa [#allocation6], 1 }
 0xcd7   :  { %1070 = vsyncpa [#allocation9], 1 }
 0xcd8   :  { %1071 = vsyncpa [#allocation12], 1 }
 0xcd9   :  { %1072 = vsyncpa [#allocation4], 1 }

// kernel: tpu_custom_call.1
= control target key start
LH: loop header
LB: loop body
LE: loop exit
PB: predicated region body
PF: predicated region fallthrough
CT: control target
= control target key end

     0   :  { %17 = vsyncpa [#allocation3], 0  ;;  %s1831_s0 = inlined_call_operand.hbm [shape: f32[2,1,4], index: 0, kind: input, shape index: {}]   ;;  %s1832_s1 = inlined_call_operand.hbm [shape: f32[2,8,32], index: 1, kind: input, shape index: {}]   ;;  %s1833_s2 = inlined_call_operand.hbm [shape: bf16[2,8,8], index: 2, kind: input, shape index: {}]   ;;  %s1834_s3 = inlined_call_operand.hbm [shape: bf16[2,8,8], index: 3, kind: input, shape index: {}]   ;;  %s1835_s4 = inlined_call_operand.hbm [shape: bf16[32,32], index: 4, kind: input, shape index: {}]   ;;  %s1836_s5 = inlined_call_operand.vmem [shape: f32[1,32], index: 5, kind: input, shape index: {}]   ;;  %s1837_s6 = inlined_call_operand.vmem [shape: bf16[32,32], index: 6, kind: input, shape index: {}]   ;;  %s1838_s7 = inlined_call_operand.vmem [shape: f32[1,32], index: 7, kind: input, shape index: {}]   ;;  %s1839_s8 = inlined_call_operand.hbm [shape: bf16[32,32], index: 8, kind: input, shape index: {}]   ;;  %s1840_s9 = inlined_call_operand.hbm [shape: f32[1,32], index: 9, kind: input, shape index: {}]   ;;  %s1841_s10 = inlined_call_operand.vmem [shape: bf16[32,32], index: 10, kind: input, shape index: {}]   ;;  %s1842_s11 = inlined_call_operand.vmem [shape: f32[1,32], index: 11, kind: input, shape index: {}]   ;;  %s1843_s12 = inlined_call_operand.hbm [shape: f32[2,1,32], index: 12, kind: output, shape index: {}]  }
   0x1   :  { %18 = vsyncpa [#allocation6], 0 }
   0x2   :  { %19 = vsyncpa [#allocation9], 0 }
   0x3   :  { %20 = vsyncpa [#allocation12], 0 }
   0x4   :  { %21 = vsyncpa [#allocation4], 0  ;;  %s1438_s21 = smov [#allocation5]   ;;  %s1252_s25 = scalar_lea.hbm %s1832_s1, 256 }
   0x5   :  { %s39_s22 = sshll.u32 %s1438_s21, 4  ;;  %p1253_p0 = scmp.ne.s32.totalorder %s1832_s1, %s1252_s25  ;;  %s40_s22 = int_to_ptr.vmem [resolvable:$true] %s39_s22 }
   0x6   :  { %p1256_p1 = scmp.lt.u32.totalorder %s1252_s25, %s1832_s1 }
   0x8   :  { %p1258_p2 = pnand %p1256_p1, %p1253_p0 }
   0xa   :  { %1261 = shalt.err (!%p1258_p2)
}
   0xb   :  { %s1262_s30 = scalar_lea.vmem %s40_s22, 256  ;;  %p1267_p4 = scmp.lt.s32.totalorder %s40_s22, %s40_s22 }
   0xc   :  { %p1263_p3 = scmp.ne.s32.totalorder %s40_s22, %s1262_s30  ;;  %p1268_p5 = scmp.lt.s32.totalorder %s1262_s30, %s1262_s30 }
   0xe   :  { %p1269_p6 = por %p1268_p5, %p1267_p4 }
  0x10   :  { %p1270_p7 = pnand %p1269_p6, %p1263_p3 }
  0x12   :  { %1273 = shalt.err (!%p1270_p7)
}
  0x13   :  { %s1439_s13 = smov 128   ;;  %s1440_s14 = smov 8  }
  0x14   :  { %45 = dma.hbm_to_vmem [thread:$0]  %s1832_s1, 256, %s40_s22, [#allocation6], %s1439_s13, %s1439_s13, %s1440_s14  }
  0x15   :  { %s1441_s17 = smov [#allocation8]   ;;  %s1442_s19 = smov [#allocation11]  }
  0x16   :  { %s63_s18 = sshll.u32 %s1441_s17, 4  ;;  %s93_s20 = sshll.u32 %s1442_s19, 4  ;;  %s64_s18 = int_to_ptr.vmem [resolvable:$true] %s63_s18  ;;  %s94_s20 = int_to_ptr.vmem [resolvable:$true] %s93_s20 }
  0x17   :  { %s1274_s24 = scalar_lea.hbm %s1834_s3, 128 }
  0x18   :  { %p1275_p8 = scmp.ne.s32.totalorder %s1834_s3, %s1274_s24  ;;  %p1278_p9 = scmp.lt.u32.totalorder %s1274_s24, %s1834_s3 }
  0x1a   :  { %p1280_p10 = pnand %p1278_p9, %p1275_p8 }
  0x1c   :  { %1283 = shalt.err (!%p1280_p10)
}
  0x1d   :  { %s1284_s1 = scalar_lea.vmem %s64_s18, 128  ;;  %p1289_p12 = scmp.lt.s32.totalorder %s64_s18, %s64_s18 }
  0x1e   :  { %p1285_p11 = scmp.ne.s32.totalorder %s64_s18, %s1284_s1  ;;  %p1290_p13 = scmp.lt.s32.totalorder %s1284_s1, %s1284_s1 }
  0x20   :  { %p1291_p0 = por %p1290_p13, %p1289_p12 }
  0x22   :  { %p1292_p1 = pnand %p1291_p0, %p1285_p11 }
  0x24   :  { %1295 = shalt.err (!%p1292_p1)
}
  0x25   :  { %s1443_s22 = smov 64   ;;  %s1444_s29 = smov 4  }
  0x26   :  { %69 = dma.hbm_to_vmem [thread:$0]  %s1834_s3, 128, %s64_s18, [#allocation9], %s1443_s22, %s1443_s22, %s1444_s29  }
  0x27   :  { %s1296_s16 = scalar_lea.hbm %s1839_s8, 256 }
  0x28   :  { %p1297_p2 = scmp.ne.s32.totalorder %s1839_s8, %s1296_s16  ;;  %p1300_p3 = scmp.lt.u32.totalorder %s1296_s16, %s1839_s8 }
  0x2a   :  { %p1302_p4 = pnand %p1300_p3, %p1297_p2 }
  0x2c   :  { %1305 = shalt.err (!%p1302_p4)
}
  0x2d   :  { %s1306_s24 = scalar_lea.vmem %s94_s20, 256  ;;  %p1311_p6 = scmp.lt.s32.totalorder %s94_s20, %s94_s20 }
  0x2e   :  { %p1307_p5 = scmp.ne.s32.totalorder %s94_s20, %s1306_s24  ;;  %p1312_p7 = scmp.lt.s32.totalorder %s1306_s24, %s1306_s24 }
  0x30   :  { %p1313_p8 = por %p1312_p7, %p1311_p6 }
  0x32   :  { %p1314_p9 = pnand %p1313_p8, %p1307_p5 }
  0x34   :  { %1317 = shalt.err (!%p1314_p9)
}
  0x35   :  { %99 = dma.hbm_to_vmem [thread:$0]  %s1839_s8, 256, %s94_s20, [#allocation12], %s1443_s22, %s1443_s22, %s1444_s29  }
  0x36   :  { %s1445_s25 = smov [#allocation2]   ;;  %s1318_s1 = scalar_lea.hbm %s1831_s0, 32 }
  0x37   :  { %s27_s26 = sshll.u32 %s1445_s25, 4  ;;  %p1319_p10 = scmp.ne.s32.totalorder %s1831_s0, %s1318_s1  ;;  %s28_s26 = int_to_ptr.vmem [resolvable:$true] %s27_s26 }
  0x38   :  { %p1322_p11 = scmp.lt.u32.totalorder %s1318_s1, %s1831_s0 }
  0x3a   :  { %p1324_p12 = pnand %p1322_p11, %p1319_p10 }
  0x3c   :  { %1327 = shalt.err (!%p1324_p12)
}
  0x3d   :  { %s1328_s16 = scalar_lea.vmem %s28_s26, 32  ;;  %p1333_p0 = scmp.lt.s32.totalorder %s28_s26, %s28_s26 }
  0x3e   :  { %p1329_p13 = scmp.ne.s32.totalorder %s28_s26, %s1328_s16  ;;  %p1334_p1 = scmp.lt.s32.totalorder %s1328_s16, %s1328_s16 }
  0x40   :  { %p1335_p2 = por %p1334_p1, %p1333_p0 }
  0x42   :  { %p1336_p3 = pnand %p1335_p2, %p1329_p13 }
  0x44   :  { %1339 = shalt.err (!%p1336_p3)
}
  0x45   :  { %s1446_s8 = smov 16   ;;  %s1447_s20 = smov 1  }
  0x46   :  { %33 = dma.hbm_to_vmem [thread:$0]  %s1831_s0, 32, %s28_s26, [#allocation3], %s1446_s8, %s1446_s8, %s1447_s20  }
  0x47   :  { %s1448_s21 = smov [#allocation7]   ;;  %s1449_s24 = smov [#allocation10]  }
  0x48   :  { %s51_s23 = sshll.u32 %s1448_s21, 4  ;;  %s75_s3 = sshll.u32 %s1449_s24, 4  ;;  %s52_s23 = int_to_ptr.vmem [resolvable:$true] %s51_s23  ;;  %s1580_s3 = int_to_ptr.vmem [resolvable:$true] %s75_s3 }
  0x49   :  { %s1340_s27 = scalar_lea.hbm %s1833_s2, 128 }
  0x4a   :  { %p1341_p4 = scmp.ne.s32.totalorder %s1833_s2, %s1340_s27  ;;  %p1344_p5 = scmp.lt.u32.totalorder %s1340_s27, %s1833_s2 }
  0x4c   :  { %p1346_p6 = pnand %p1344_p5, %p1341_p4 }
  0x4e   :  { %1349 = shalt.err (!%p1346_p6)
}
  0x4f   :  { %s1350_s0 = scalar_lea.vmem %s52_s23, 128  ;;  %p1355_p8 = scmp.lt.s32.totalorder %s52_s23, %s52_s23 }
  0x50   :  { %p1351_p7 = scmp.ne.s32.totalorder %s52_s23, %s1350_s0  ;;  %p1356_p9 = scmp.lt.s32.totalorder %s1350_s0, %s1350_s0 }
  0x52   :  { %p1357_p10 = por %p1356_p9, %p1355_p8 }
  0x54   :  { %p1358_p11 = pnand %p1357_p10, %p1351_p7 }
  0x56   :  { %1361 = shalt.err (!%p1358_p11)
}
  0x57   :  { %57 = dma.hbm_to_vmem [thread:$0]  %s1833_s2, 128, %s52_s23, [#allocation6], %s1443_s22, %s1443_s22, %s1444_s29  }
  0x58   :  { %s1362_s17 = scalar_lea.hbm %s1835_s4, 256 }
  0x59   :  { %p1363_p12 = scmp.ne.s32.totalorder %s1835_s4, %s1362_s17  ;;  %p1366_p13 = scmp.lt.u32.totalorder %s1362_s17, %s1835_s4 }
  0x5b   :  { %p1368_p0 = pnand %p1366_p13, %p1363_p12 }
  0x5d   :  { %1371 = shalt.err (!%p1368_p0)
}
  0x5e   :  { %s1372_s25 = scalar_lea.vmem %s1580_s3, 256  ;;  %p1377_p2 = scmp.lt.s32.totalorder %s1580_s3, %s1580_s3 }
  0x5f   :  { %p1373_p1 = scmp.ne.s32.totalorder %s1580_s3, %s1372_s25  ;;  %p1378_p3 = scmp.lt.s32.totalorder %s1372_s25, %s1372_s25 }
  0x61   :  { %p1379_p4 = por %p1378_p3, %p1377_p2 }
  0x63   :  { %p1380_p5 = pnand %p1379_p4, %p1373_p1 }
  0x65   :  { %1383 = shalt.err (!%p1380_p5)
}
  0x66   :  { %81 = dma.hbm_to_vmem [thread:$0]  %s1835_s4, 256, %s1580_s3, [#allocation9], %s1443_s22, %s1443_s22, %s1444_s29  }
  0x67   :  { %s1450_s27 = smov [#allocation13]   ;;  %s1384_s13 = scalar_lea.hbm %s1840_s9, 16 }
  0x68   :  { %s106_s28 = sshll.u32 %s1450_s27, 4  ;;  %p1385_p6 = scmp.ne.s32.totalorder %s1840_s9, %s1384_s13  ;;  %s107_s28 = int_to_ptr.vmem [resolvable:$true] %s106_s28 }
  0x69   :  { %p1388_p7 = scmp.lt.u32.totalorder %s1384_s13, %s1840_s9 }
  0x6b   :  { %p1390_p8 = pnand %p1388_p7, %p1385_p6 }
  0x6d   :  { %1393 = shalt.err (!%p1390_p8)
}
  0x6e   :  { %s1394_s16 = scalar_lea.vmem %s107_s28, 16  ;;  %s1398_s4 = scalar_lea.vmem %s107_s28, 32 }
  0x6f   :  { %p1395_p9 = scmp.ne.s32.totalorder %s107_s28, %s1394_s16  ;;  %p1399_p10 = scmp.lt.s32.totalorder %s107_s28, %s107_s28 }
  0x70   :  { %p1400_p11 = scmp.lt.s32.totalorder %s1398_s4, %s1394_s16 }
  0x72   :  { %p1401_p12 = por %p1400_p11, %p1399_p10 }
  0x74   :  { %p1402_p13 = pnand %p1401_p12, %p1395_p9 }
  0x76   :  { %1405 = shalt.err (!%p1402_p13)
}
  0x77   :  { %109 = dma.hbm_to_vmem [thread:$0]  %s1840_s9, 16, %s107_s28, [#allocation12]  }
  0x78   :  { %1428 = dma.done.wait [#allocation3], 32  }
  0x79   :  { %1429 = vsyncadd [#allocation3], 4294967264 }
  0x7a   :  { %1430 = dma.done.wait [#allocation6], 384  }
  0x7b   :  { %1431 = vsyncadd [#allocation6], 4294966912 }
  0x7c   :  { %1432 = dma.done.wait [#allocation9], 384  }
  0x7d   :  { %1433 = vsyncadd [#allocation9], 4294966912 }
  0x7e   :  { %1434 = dma.done.wait [#allocation12], 272  }
  0x7f   :  { %1435 = vsyncadd [#allocation12], 4294967024  ;;  %v1629_v0 = vld [vmem:[#allocation2] ss:$0 sm:$0xff]  ;;  %v1631_v1 = vld [vmem:[#allocation2 + $0x1] ss:$0 sm:$0xff]  ;;  %v140_v2 = vlaneseq }
  0x80   :  { %s1451_s3 = smov 126   ;;  %s1452_s9 = smov 127   ;;  %v1454_v17 = vmov 0   ;;  %v1236_v34 = vld [vmem:[#allocation10] sm:$0xff]   ;;  %v1455_v35 = vmov 0.0   ;;  %v1237_v38 = vld [vmem:[#allocation10 + $0x8] sm:$0xff]  }
  0x81   :  { %169 = vrot.lane.b32.xlu0 %v1629_v0, %s1451_s3  ;;  %v1636_v3 = vshrl.u32 %v140_v2, 7  ;;  %s1453_s17 = smov 125   ;;  %1230 = vset.pattern.permute.xlu1 %v1454_v17  ;;  %vm1456_vm4 = vmmov 0   ;;  %v1689_v40 = vld [vmem:[#allocation5] sm:$0xff]  ;;  %v1691_v41 = vld [vmem:[#allocation5 + $0x8] sm:$0xff]  ;;  %vm262_vm8 = vcmask 261120  }
  0x82   :  { %1229 = vset.pattern.permute.xlu0 %v1454_v17  ;;  %1129 = vmatprep.subr.bf16.mxu0 %v1455_v35  ;;  %vm320_vm12 = vcmask 1043456   ;;  %v229_v58 = vld [vmem:[#allocation7] sm:$0xf]  ;;  %vm316_vm13 = vcmask 64512   ;;  %v230_v60 = vld [vmem:[#allocation7 + $0x4] sm:$0xf] }
  0x83   :  { %v1639_v4 = vcvt.s32.f32 %v1636_v3  ;;  %1130 = vmatpush3.bf16.msra.mxu0 %v1236_v34  ;;  %1137 = vmatprep.subr.bf16.mxu1 %v1455_v35  ;;  %v1238_v61 = vld [vmem:[%s1837_s6] sm:$0xff]   ;;  %v1239_v62 = vld [vmem:[%s1837_s6 + $0x8] sm:$0xff]   ;;  %vm964_vm14 = vcmask 1041409   ;;  %vm967_vm15 = vcmask 58368  }
  0x84   :  { %1131 = vmatprep.subr.bf16.mxu0 %v1455_v35  ;;  %1133 = vmatprep.mubr.msk.bf16.mxu0 %vm1456_vm4, %v1455_v35  ;;  %v1080_v63 = vld [vmem:[%s1836_s5] ss:$0 sm:$0xff] }
  0x85   :  { %171 = vrot.lane.b32.xlu0 %v1631_v1, %s1451_s3  ;;  %v167_v5 = vsub.f32 %v1639_v4, %v1629_v0  ;;  %v168_v7 = vsub.f32 %v1639_v4, %v1631_v1  ;;  %vm179_vm0 = vcmp.lt.f32.partialorder %v1639_v4, %v1629_v0  ;;  %vm180_vm1 = vcmp.lt.f32.partialorder %v1639_v4, %v1631_v1 }
  0x86   :  { %vm181_vm2 = vcmp.le.f32.partialorder %v1639_v4, %v1629_v0  ;;  %vm182_vm3 = vcmp.le.f32.partialorder %v1639_v4, %v1631_v1  ;;  %v155_v24 = vsub.f32 %v1629_v0, %v1639_v4  ;;  %v156_v27 = vsub.f32 %v1631_v1, %v1639_v4  ;;  %1139 = vmatprep.mubr.msk.bf16.mxu1 %vm1456_vm4, %v1455_v35 }
  0x87   :  { %v215_v18 = vsel %vm181_vm2, 1, %v1454_v17  ;;  %v216_v19 = vsel %vm182_vm3, 1, %v1454_v17  ;;  %1132 = vmatpush3.bf16.msra.mxu0 %v1237_v38  ;;  %vm214_vm5 = vcmp.ge.f32.partialorder %v1639_v4, %v1631_v1  ;;  %vm213_vm9 = vcmp.ge.f32.partialorder %v1639_v4, %v1629_v0 }
  0x88   :  { %1149 = vmatprep.subr.bf16.mxu0 %v1455_v35 }
  0xf3   :  { %v170_v6 = vpop.permute.xlu0 %169 }
  0xf4   :  { %v175_v8 = vmul.f32 %v170_v6, %v167_v5 }
  0xf6   :  { %v177_v9 = vsub.f32 1.0, %v175_v8 }
  0xf7   :  { %v172_v10 = vpop.permute.xlu0 %171 }
  0xf8   :  { %v176_v11 = vmul.f32 %v172_v10, %v168_v7  ;;  %185 = vrot.lane.b32.xlu1 %v177_v9, %s1447_s20 }
  0xfa   :  { %v178_v12 = vsub.f32 1.0, %v176_v11 }
  0xfc   :  { %187 = vrot.lane.b32.xlu1 %v178_v12, %s1447_s20 }
 0x16a   :  { %v186_v13 = vpop.permute.xlu1 %185 }
 0x16b   :  { %v191_v14 = vsel %vm179_vm0, %v186_v13, 0.0 }
 0x16c   :  { %195 = vrot.lane.b32.xlu0 %v191_v14, %s1452_s9 }
 0x16e   :  { %v188_v15 = vpop.permute.xlu1 %187 }
 0x16f   :  { %v192_v16 = vsel %vm180_vm1, %v188_v15, 0.0 }
 0x170   :  { %197 = vrot.lane.b32.xlu1 %v192_v16, %s1452_s9  ;;  %157 = vrot.lane.b32.xlu0 %v1629_v0, %s1453_s17 }
 0x174   :  { %159 = vrot.lane.b32.xlu1 %v1631_v1, %s1453_s17 }
 0x1de   :  { %v196_v20 = vpop.permute.xlu0 %195 }
 0x1df   :  { %v201_v21 = vsel %vm181_vm2, 0.0, %v196_v20 }
 0x1e0   :  { %205 = vrot.lane.b32.xlu0 %v201_v21, %s1452_s9 }
 0x1e2   :  { %v198_v22 = vpop.permute.xlu1 %197  ;;  %v158_v25 = vpop.permute.xlu0 %157 }
 0x1e3   :  { %v202_v23 = vsel %vm182_vm3, 0.0, %v198_v22  ;;  %v163_v26 = vmul.f32 %v158_v25, %v155_v24 }
 0x1e4   :  { %207 = vrot.lane.b32.xlu1 %v202_v23, %s1452_s9 }
 0x1e5   :  { %v165_v29 = vsub.f32 1.0, %v163_v26 }
 0x1e6   :  { %v160_v28 = vpop.permute.xlu1 %159 }
 0x1e7   :  { %v164_v30 = vmul.f32 %v160_v28, %v156_v27 }
 0x1e9   :  { %v166_v32 = vsub.f32 1.0, %v164_v30  ;;  %v1241_v30 = vld [vmem:[#allocation11 + $0x8] sm:$0xff]  }
 0x252   :  { %v206_v31 = vpop.permute.xlu0 %205 }
 0x253   :  { %v211_v33 = vsel %vm179_vm0, %v165_v29, %v206_v31  ;;  %v1240_v29 = vld [vmem:[#allocation11] sm:$0xff]   ;;  %v1086_v31 = vld [vmem:[%s1838_s7] ss:$0 sm:$0xff]  ;;  %vm1050_vm0 = vcmask 253952  }
 0x254   :  { %235 = vperm.xlu0 %1229, %v211_v33  }
 0x256   :  { %v208_v36 = vpop.permute.xlu1 %207 }
 0x257   :  { %v212_v37 = vsel %vm180_vm1, %v166_v32, %v208_v36 }
 0x258   :  { %240 = vperm.xlu1 %1230, %v212_v37   ;;  %219 = vrot.lane.b32.xlu0 %v216_v19, %s1452_s9 }
 0x25c   :  { %217 = vrot.lane.b32.xlu1 %v215_v18, %s1452_s9 }
 0x2d3   :  { %v1687_v39 = vpop.permute.xlu0 %235 }
 0x2d4   :  { %v243_v44 = vmul.f32 %v1687_v39, %v1689_v40 }
 0x2d7   :  { %v1695_v42 = vpop.permute.xlu1 %240  ;;  %v220_v43 = vpop.permute.xlu0 %219 }
 0x2d8   :  { %v244_v45 = vmul.f32 %v1695_v42, %v1691_v41  ;;  %vm222_vm6 = vcmp.ne.s32.totalorder %v220_v43, 0 }
 0x2d9   :  { %vm224_vm7 = vmand %vm214_vm5, %vm222_vm6 }
 0x2da   :  { %v245_v46 = vpack.c.bf16 %v244_v45, %v243_v44  ;;  %v1076_v48 = vsel %vm224_vm7, 1.0, %v1455_v35 }
 0x2db   :  { %v218_v47 = vpop.permute.xlu1 %217 }
 0x2dc   :  { %vm221_vm10 = vcmp.ne.s32.totalorder %v218_v47, 0  ;;  %1134 = vmatmul.mubr.msk.bf16.vlgmr.msra.gmra.mrb[0].mxu0 %vm262_vm8, %v245_v46 }
 0x2dd   :  { %vm223_vm11 = vmand %vm213_vm9, %vm221_vm10  ;;  %1153 = vmatprep.mubr.msk.bf16.mxu0 %vm1456_vm4, %v1455_v35  ;;  %1150 = vmatpush3.bf16.msra.mxu0 %v1238_v61 }
 0x2de   :  { %v1075_v49 = vsel %vm223_vm11, 1.0, %v1455_v35  ;;  %1151 = vmatprep.subr.bf16.mxu0 %v1455_v35 }
 0x2df   :  { %v1231_v50 = vpack.i.bf16 %v1076_v48, %v1075_v49 }
 0x2e1   :  { %1232 = vperm.xlu1 %1230, %v1231_v50   ;;  %1152 = vmatpush3.bf16.msra.mxu0 %v1239_v62 }
 0x2e2   :  { %1163 = vmatprep.subr.bf16.mxu0 %v1455_v35 }
 0x3af   :  { %v300_v51 = vpop.f32.mrb[0].mxu0 }
 0x3b0   :  { %v307_v52 = vpack.c.bf16 %v300_v51, %v300_v51  ;;  %v1135_v53 = vpop.f32.mrb[1].mxu0 }
 0x3b1   :  { %v303_v54 = vpop.f32.mrb[2].mxu0 }
 0x3b2   :  { %v308_v55 = vpack.c.bf16 %v303_v54, %v303_v54  ;;  %v1136_v56 = vpop.f32.mrb[3].mxu0  ;;  %v322_v57 = vsel %vm320_vm12, %v307_v52, 0 }
 0x3b3   :  { %1138 = vmatpush3.bf16.msra.mxu1 %v322_v57 }
 0x3b4   :  { %1143 = vmatprep.subr.bf16.mxu1 %v1455_v35  ;;  %v368_v59 = vsel %vm320_vm12, %v308_v55, 0 }
 0x3b6   :  { %1140 = vmatmul.mubr.msk.bf16.vlgmr.msra.gmra.mrb[0].mxu1 %vm316_vm13, %v229_v58 }
 0x3b7   :  { %1144 = vmatpush3.bf16.msra.mxu1 %v368_v59  ;;  %1145 = vmatprep.mubr.msk.bf16.mxu1 %vm1456_vm4, %v1455_v35 }
 0x3b8   :  { %1157 = vmatprep.subr.bf16.mxu1 %v1455_v35 }
 0x3be   :  { %1146 = vmatmul.mubr.msk.bf16.vlgmr.msra.gmra.mrb[4].mxu1 %vm316_vm13, %v230_v60 }
 0x3bf   :  { %1159 = vmatprep.mubr.msk.bf16.mxu1 %vm1456_vm4, %v1455_v35 }
 0x489   :  { %v358_v0 = vpop.f32.mrb[0].mxu1 }
 0x48a   :  { %v359_v1 = vadd.f32 %v1080_v63, %v358_v0  ;;  %v1141_v4 = vpop.f32.mrb[1].mxu1 }
 0x48b   :  { %v361_v5 = vpop.f32.mrb[2].mxu1  ;;  %v1242_v4 = vld [vmem:[%s1841_s10] sm:$0xff]  }
 0x48c   :  { %v1142_v6 = vpop.f32.mrb[3].mxu1  ;;  %v410_v7 = vmax.f32 %v359_v1, 0.0  ;;  %v232_v1 = vld [vmem:[#allocation8 + $0x4] sm:$0xf]  ;;  %v1243_v5 = vld [vmem:[%s1841_s10 + $0x8] sm:$0xff]  }
 0x48d   :  { %v1092_v6 = vld [vmem:[#allocation13] ss:$0 sm:$0xff] }
 0x48e   :  { %v412_v9 = vpack.c.bf16 %v410_v7, %v410_v7 }
 0x490   :  { %v414_v15 = vunpack.c.l.bf16 %v412_v9 }
 0x491   :  { %v404_v8 = vpop.f32.mrb[4].mxu1 }
 0x492   :  { %v405_v10 = vadd.f32 %v1080_v63, %v404_v8  ;;  %v1147_v11 = vpop.f32.mrb[5].mxu1  ;;  %v416_v18 = vmul.f32 %v414_v15, %v1687_v39  ;;  %v231_v63 = vld [vmem:[#allocation8] sm:$0xf] }
 0x493   :  { %v407_v12 = vpop.f32.mrb[6].mxu1 }
 0x494   :  { %v411_v13 = vmax.f32 %v405_v10, 0.0  ;;  %v1148_v14 = vpop.f32.mrb[7].mxu1 }
 0x496   :  { %v413_v16 = vpack.c.bf16 %v411_v13, %v411_v13 }
 0x498   :  { %v415_v17 = vunpack.c.l.bf16 %v413_v16 }
 0x49a   :  { %v417_v19 = vmul.f32 %v415_v17, %v1695_v42 }
 0x49c   :  { %v418_v20 = vpack.c.bf16 %v417_v19, %v416_v18 }
 0x49e   :  { %1154 = vmatmul.mubr.msk.bf16.vlgmr.msra.gmra.mrb[4].mxu0 %vm262_vm8, %v418_v20 }
 0x49f   :  { %1165 = vmatprep.mubr.msk.bf16.mxu0 %vm1456_vm4, %v1455_v35 }
 0x571   :  { %v472_v21 = vpop.f32.mrb[4].mxu0 }
 0x572   :  { %v479_v22 = vpack.c.bf16 %v472_v21, %v472_v21  ;;  %v1155_v23 = vpop.f32.mrb[5].mxu0 }
 0x573   :  { %v475_v24 = vpop.f32.mrb[6].mxu0 }
 0x574   :  { %v489_v25 = vsel %vm320_vm12, %v479_v22, 0  ;;  %v480_v26 = vpack.c.bf16 %v475_v24, %v475_v24  ;;  %v1156_v27 = vpop.f32.mrb[7].mxu0 }
 0x575   :  { %1158 = vmatpush3.bf16.msra.mxu1 %v489_v25 }
 0x576   :  { %v532_v28 = vsel %vm320_vm12, %v480_v26, 0  ;;  %1169 = vmatprep.subr.bf16.mxu1 %v1455_v35 }
 0x577   :  { %1164 = vmatpush3.bf16.msra.mxu0 %v532_v28 }
 0x578   :  { %1160 = vmatmul.mubr.msk.bf16.vlgmr.msra.gmra.mrb[8].mxu1 %vm316_vm13, %v229_v58  ;;  %1177 = vmatprep.subr.bf16.mxu0 %v1455_v35 }
 0x579   :  { %1173 = vmatprep.mubr.msk.bf16.mxu1 %vm1456_vm4, %v1455_v35  ;;  %1170 = vmatpush3.bf16.msra.mxu1 %v1240_v29 }
 0x57a   :  { %1166 = vmatmul.mubr.msk.bf16.vlgmr.msra.gmra.mrb[8].mxu0 %vm316_vm13, %v230_v60  ;;  %1171 = vmatprep.subr.bf16.mxu1 %v1455_v35 }
 0x57b   :  { %1179 = vmatprep.mubr.msk.bf16.mxu0 %vm1456_vm4, %v1455_v35 }
 0x57d   :  { %1172 = vmatpush3.bf16.msra.mxu1 %v1241_v30 }
 0x57e   :  { %1183 = vmatprep.subr.bf16.mxu1 %v1455_v35 }
 0x64b   :  { %v525_v32 = vpop.f32.mrb[8].mxu1 }
 0x64c   :  { %v526_v33 = vadd.f32 %v1086_v31, %v525_v32  ;;  %v1161_v34 = vpop.f32.mrb[9].mxu1 }
 0x64d   :  { %v528_v36 = vpop.f32.mrb[10].mxu1  ;;  %v568_v37 = vpop.f32.mrb[8].mxu0 }
 0x64e   :  { %v574_v38 = vmax.f32 %v526_v33, 0.0  ;;  %v569_v43 = vadd.f32 %v1086_v31, %v568_v37  ;;  %v1162_v44 = vpop.f32.mrb[11].mxu1  ;;  %v1167_v45 = vpop.f32.mrb[9].mxu0 }
 0x64f   :  { %v571_v46 = vpop.f32.mrb[10].mxu0 }
 0x650   :  { %v1749_v47 = vpack.c.bf16 %v574_v38, %v574_v38  ;;  %v575_v48 = vmax.f32 %v569_v43, 0.0  ;;  %v1168_v49 = vpop.f32.mrb[11].mxu0 }
 0x652   :  { %v578_v50 = vunpack.c.l.bf16 %v1749_v47  ;;  %v1752_v51 = vpack.c.bf16 %v575_v48, %v575_v48 }
 0x654   :  { %v579_v52 = vunpack.c.l.bf16 %v1752_v51  ;;  %v580_v53 = vmul.f32 %v578_v50, %v1687_v39 }
 0x656   :  { %v581_v54 = vmul.f32 %v579_v52, %v1695_v42 }
 0x658   :  { %v582_v55 = vpack.c.bf16 %v581_v54, %v580_v53 }
 0x65a   :  { %1174 = vmatmul.mubr.msk.bf16.vlgmr.msra.gmra.mrb[12].mxu1 %vm262_vm8, %v582_v55 }
 0x65b   :  { %1185 = vmatprep.mubr.msk.bf16.mxu1 %vm1456_vm4, %v1455_v35 }
 0x72d   :  { %v636_v56 = vpop.f32.mrb[12].mxu1 }
 0x72e   :  { %v643_v57 = vpack.c.bf16 %v636_v56, %v636_v56  ;;  %v1175_v58 = vpop.f32.mrb[13].mxu1  ;;  %v1233_v56 = vpop.permute.xlu1 %1232 }
 0x72f   :  { %v639_v59 = vpop.f32.mrb[14].mxu1 }
 0x730   :  { %v656_v60 = vsel %vm320_vm12, %v643_v57, 0  ;;  %v644_v61 = vpack.c.bf16 %v639_v59, %v639_v59  ;;  %v1176_v62 = vpop.f32.mrb[15].mxu1  ;;  %v1234_v59 = vunpack.i.l.bf16 %v1233_v56 }
 0x731   :  { %1178 = vmatpush3.bf16.msra.mxu0 %v656_v60  ;;  %v1235_v62 = vunpack.i.h.bf16 %v1233_v56 }
 0x732   :  { %v702_v0 = vsel %vm320_vm12, %v644_v61, 0  ;;  %1189 = vmatprep.subr.bf16.mxu0 %v1455_v35 }
 0x733   :  { %1184 = vmatpush3.bf16.msra.mxu1 %v702_v0 }
 0x734   :  { %1180 = vmatmul.mubr.msk.bf16.vlgmr.msra.gmra.mrb[12].mxu0 %vm316_vm13, %v231_v63  ;;  %1197 = vmatprep.subr.bf16.mxu1 %v1455_v35 }
 0x735   :  { %1193 = vmatprep.mubr.msk.bf16.mxu0 %vm1456_vm4, %v1455_v35  ;;  %1190 = vmatpush3.bf16.msra.mxu0 %v1242_v4 }
 0x736   :  { %1186 = vmatmul.mubr.msk.bf16.vlgmr.msra.gmra.mrb[16].mxu1 %vm316_vm13, %v232_v1  ;;  %1191 = vmatprep.subr.bf16.mxu0 %v1455_v35 }
 0x737   :  { %1199 = vmatprep.mubr.msk.bf16.mxu1 %vm1456_vm4, %v1455_v35 }
 0x739   :  { %1192 = vmatpush3.bf16.msra.mxu0 %v1243_v5 }
 0x73a   :  { %1203 = vmatprep.subr.bf16.mxu0 %v1455_v35 }
 0x807   :  { %v692_v7 = vpop.f32.mrb[12].mxu0 }
 0x808   :  { %v693_v8 = vadd.f32 %v1092_v6, %v692_v7  ;;  %v1181_v9 = vpop.f32.mrb[13].mxu0 }
 0x809   :  { %v695_v10 = vpop.f32.mrb[14].mxu0  ;;  %v738_v11 = vpop.f32.mrb[16].mxu1 }
 0x80a   :  { %v744_v12 = vmax.f32 %v693_v8, 0.0  ;;  %v739_v13 = vadd.f32 %v1092_v6, %v738_v11  ;;  %v1182_v14 = vpop.f32.mrb[15].mxu0  ;;  %v1187_v15 = vpop.f32.mrb[17].mxu1 }
 0x80b   :  { %v741_v16 = vpop.f32.mrb[18].mxu1 }
 0x80c   :  { %v746_v17 = vpack.c.bf16 %v744_v12, %v744_v12  ;;  %v745_v18 = vmax.f32 %v739_v13, 0.0  ;;  %v1188_v19 = vpop.f32.mrb[19].mxu1 }
 0x80e   :  { %v748_v20 = vunpack.c.l.bf16 %v746_v17  ;;  %v747_v21 = vpack.c.bf16 %v745_v18, %v745_v18  ;;  %v955_v18 = vand.u32 127, %v140_v2 }
 0x810   :  { %v749_v22 = vunpack.c.l.bf16 %v747_v21  ;;  %v750_v23 = vmul.f32 %v748_v20, %v1687_v39  ;;  %v958_v19 = vsub.s32 %v955_v18, %v1636_v3 }
 0x812   :  { %v751_v24 = vmul.f32 %v749_v22, %v1695_v42 }
 0x814   :  { %v752_v25 = vpack.c.bf16 %v751_v24, %v750_v23 }
 0x816   :  { %1194 = vmatmul.mubr.msk.bf16.vlgmr.msra.gmra.mrb[16].mxu0 %vm262_vm8, %v752_v25 }
 0x817   :  { %1205 = vmatprep.mubr.msk.bf16.mxu0 %vm1456_vm4, %v1455_v35  ;;  %v1098_v35 = vld [vmem:[%s1842_s11] ss:$0 sm:$0xff]  ;;  %s1457_s11 = smov [#allocation14]  }
 0x818   :  { %s1058_s30 = sshll.u32 %s1457_s11, 4  ;;  %s1059_s30 = int_to_ptr.vmem [resolvable:$true] %s1058_s30 }
 0x819   :  { %s1406_s13 = scalar_lea.vmem %s1059_s30, 32  ;;  %p1411_p1 = scmp.lt.s32.totalorder %s1059_s30, %s1059_s30 }
 0x81a   :  { %p1407_p0 = scmp.ne.s32.totalorder %s1059_s30, %s1406_s13  ;;  %p1412_p2 = scmp.lt.s32.totalorder %s1406_s13, %s1406_s13 }
 0x81c   :  { %p1413_p3 = por %p1412_p2, %p1411_p1 }
 0x81e   :  { %p1414_p4 = pnand %p1413_p3, %p1407_p0 }
 0x8e9   :  { %v806_v26 = vpop.f32.mrb[16].mxu0 }
 0x8ea   :  { %v813_v27 = vpack.c.bf16 %v806_v26, %v806_v26  ;;  %v1195_v28 = vpop.f32.mrb[17].mxu0  ;;  %v974_v26 = vsub.s32 0, %v1636_v3 }
 0x8eb   :  { %v809_v29 = vpop.f32.mrb[18].mxu0 }
 0x8ec   :  { %v823_v30 = vsel %vm320_vm12, %v813_v27, 0  ;;  %v814_v31 = vpack.c.bf16 %v809_v29, %v809_v29  ;;  %v1196_v32 = vpop.f32.mrb[19].mxu0  ;;  %v978_v27 = vsub.s32 1, %v1636_v3 }
 0x8ed   :  { %1198 = vmatpush3.bf16.msra.mxu1 %v823_v30 }
 0x8ee   :  { %v866_v33 = vsel %vm320_vm12, %v814_v31, 0 }
 0x8ef   :  { %1204 = vmatpush3.bf16.msra.mxu0 %v866_v33 }
 0x8f0   :  { %1200 = vmatmul.mubr.msk.bf16.vlgmr.msra.gmra.mrb[20].mxu1 %vm316_vm13, %v231_v63 }
 0x8f2   :  { %1206 = vmatmul.mubr.msk.bf16.vlgmr.msra.gmra.mrb[20].mxu0 %vm316_vm13, %v232_v1 }
 0x9c3   :  { %v859_v39 = vpop.f32.mrb[20].mxu1 }
 0x9c4   :  { %v860_v42 = vadd.f32 %v1098_v35, %v859_v39  ;;  %v1201_v34 = vpop.f32.mrb[21].mxu1 }
 0x9c5   :  { %v902_v36 = vpop.f32.mrb[20].mxu0  ;;  %v862_v37 = vpop.f32.mrb[22].mxu1 }
 0x9c6   :  { %v908_v38 = vmax.f32 %v860_v42, 0.0  ;;  %v903_v43 = vadd.f32 %v1098_v35, %v902_v36  ;;  %v1207_v44 = vpop.f32.mrb[21].mxu0  ;;  %v1202_v45 = vpop.f32.mrb[23].mxu1 }
 0x9c7   :  { %v905_v46 = vpop.f32.mrb[22].mxu0 }
 0x9c8   :  { %v910_v48 = vpack.c.bf16 %v908_v38, %v908_v38  ;;  %v909_v49 = vmax.f32 %v903_v43, 0.0  ;;  %v1208_v53 = vpop.f32.mrb[23].mxu0 }
 0x9ca   :  { %v912_v54 = vunpack.c.l.bf16 %v910_v48  ;;  %v911_v55 = vpack.c.bf16 %v909_v49, %v909_v49 }
 0x9cc   :  { %v914_v57 = vmul.f32 0.2, %v912_v54  ;;  %v913_v58 = vunpack.c.l.bf16 %v911_v55 }
 0x9ce   :  { %v916_v60 = vadd.f32 %v914_v57, %v578_v50  ;;  %v915_v61 = vmul.f32 0.2, %v913_v58 }
 0x9d0   :  { %v928_v63 = vmul.f32 %v1234_v59, %v916_v60  ;;  %v917_v0 = vadd.f32 %v915_v61, %v579_v52 }
 0x9d2   :  { %v930_v1 = vsel %vm262_vm8, %v928_v63, 0.0  ;;  %v929_v4 = vmul.f32 %v1235_v62, %v917_v0 }
 0x9d3   :  { %v931_v5 = vrot.slane %v930_v1, 4 }
 0x9d4   :  { %v937_v6 = vsel %vm262_vm8, %v929_v4, 0.0 }
 0x9d5   :  { %v938_v7 = vrot.slane %v937_v6, 4  ;;  %v932_v8 = vadd.f32 %v931_v5, %v930_v1 }
 0x9d7   :  { %v933_v9 = vrot.slane %v932_v8, 2  ;;  %v939_v10 = vadd.f32 %v938_v7, %v937_v6 }
 0x9d9   :  { %v934_v11 = vadd.f32 %v933_v9, %v932_v8  ;;  %v940_v12 = vrot.slane %v939_v10, 2 }
 0x9db   :  { %v935_v47 = vrot.slane %v934_v11, 1  ;;  %v941_v50 = vadd.f32 %v940_v12, %v939_v10 }
 0x9dd   :  { %v936_v13 = vadd.f32 %v935_v47, %v934_v11  ;;  %v942_v14 = vrot.slane %v941_v50, 1 }
 0x9df   :  { %v944_v15 = vmul.f32 %v936_v13, %v1689_v40  ;;  %v943_v51 = vadd.f32 %v942_v14, %v941_v50 }
 0x9e1   :  { %v946_v52 = vsel %vm262_vm8, %v944_v15, 0.0  ;;  %v945_v16 = vmul.f32 %v943_v51, %v1691_v41 }
 0x9e2   :  { %947 = vadd.xlane.f32.xlu0 %v946_v52 }
 0x9e3   :  { %v949_v17 = vsel %vm262_vm8, %v945_v16, 0.0 }
 0x9e4   :  { %950 = vadd.xlane.f32.xlu1 %v949_v17 }
 0xa6f   :  { %v948_v20 = vpop.xlane.xlu0 %947 }
 0xa70   :  { %v959_v22 = vrot.slane %v948_v20, %v958_v19 }
 0xa71   :  { %v951_v21 = vpop.xlane.xlu1 %950 }
 0xa72   :  { %v963_v23 = vrot.slane %v951_v21, %v958_v19 }
 0xa74   :  { %v965_v24 = vsel %vm964_vm14, %v963_v23, %v959_v22 }
 0xa75   :  { %v968_v25 = vsel %vm967_vm15, %v965_v24, -inf }
 0xa76   :  { %969 = vmax.xlane.f32.xlu0 %v968_v25 }
 0xb03   :  { %v970_v28 = vpop.xlane.xlu0 %969 }
 0xb04   :  { %v975_v29 = vrot.slane %v970_v28, %v974_v26  ;;  %v979_v2 = vrot.slane %v970_v28, %v978_v27 }
 0xb06   :  { %v982_v30 = vsub.f32 %v948_v20, %v975_v29  ;;  %v983_v31 = vsub.f32 %v951_v21, %v979_v2 }
 0xb08   :  { %v984_v32 = vmul.f32 1.442695, %v982_v30  ;;  %v986_v33 = vmul.f32 1.442695, %v983_v31 }
 0xb0a   :  { %1244 = vpow2.f32 %v984_v32 }
 0xb0b   :  { %1246 = vpow2.f32 %v986_v33 }
 0xb14   :  { %v1245_v35 = vpop.eup %1244 }
 0xb15   :  { %v1247_v39 = vpop.eup %1246  ;;  %991 = vperm.xlu0 %1229, %v1245_v35  }
 0xb16   :  { %994 = vperm.xlu1 %1230, %v1247_v39  }
 0xb94   :  { %v992_v42 = vpop.permute.xlu0 %991 }
 0xb95   :  { %v995_v34 = vpop.permute.xlu1 %994  ;;  %v999_v36 = vrot.slane %v992_v42, %v958_v19 }
 0xb96   :  { %v1003_v37 = vrot.slane %v995_v34, %v958_v19 }
 0xb98   :  { %v1004_v38 = vsel %vm964_vm14, %v1003_v37, %v999_v36 }
 0xb99   :  { %v1006_v3 = vsel %vm967_vm15, %v1004_v38, 0.0 }
 0xb9a   :  { %1007 = vadd.xlane.f32.xlu1 %v1006_v3 }
 0xc27   :  { %v1008_v43 = vpop.xlane.xlu1 %1007 }
 0xc28   :  { %v1013_v44 = vrot.slane %v1008_v43, %v974_v26  ;;  %v1017_v45 = vrot.slane %v1008_v43, %v978_v27 }
 0xc2a   :  { %1248 = vrcp.f32 %v1013_v44 }
 0xc2b   :  { %1250 = vrcp.f32 %v1017_v45 }
 0xc34   :  { %v1249_v46 = vpop.eup %1248 }
 0xc35   :  { %v1021_v48 = vmul.f32 %v1249_v46, %v1245_v35  ;;  %v1251_v49 = vpop.eup %1250 }
 0xc36   :  { %v1023_v53 = vmul.f32 %v1251_v49, %v1247_v39 }
 0xc37   :  { %1026 = vperm.xlu0 %1229, %v1021_v48  }
 0xc3b   :  { %1031 = vperm.xlu0 %1229, %v1023_v53  }
 0xcb6   :  { %v1027_v54 = vpop.permute.xlu0 %1026 }
 0xcb7   :  { %v1034_v55 = vmul.f32 %v1027_v54, %v1689_v40 }
 0xcb9   :  { %v1036_v56 = vsel %vm262_vm8, %v1034_v55, 0.0 }
 0xcba   :  { %v1037_v57 = vrot.slane %v1036_v56, 4  ;;  %v1032_v58 = vpop.permute.xlu0 %1031 }
 0xcbb   :  { %v1035_v59 = vmul.f32 %v1032_v58, %v1691_v41 }
 0xcbc   :  { %v1038_v60 = vadd.f32 %v1037_v57, %v1036_v56 }
 0xcbd   :  { %v1043_v61 = vsel %vm262_vm8, %v1035_v59, 0.0 }
 0xcbe   :  { %v1039_v62 = vrot.slane %v1038_v60, 2  ;;  %v1044_v63 = vrot.slane %v1043_v61, 4 }
 0xcc0   :  { %v1040_v0 = vadd.f32 %v1039_v62, %v1038_v60  ;;  %v1045_v1 = vadd.f32 %v1044_v63, %v1043_v61 }
 0xcc2   :  { %v1041_v4 = vrot.slane %v1040_v0, 1  ;;  %v1046_v5 = vrot.slane %v1045_v1, 2 }
 0xcc4   :  { %v1042_v6 = vadd.f32 %v1041_v4, %v1040_v0  ;;  %v1047_v7 = vadd.f32 %v1046_v5, %v1045_v1 }
 0xcc6   :  { %v1048_v40 = vrot.slane %v1047_v7, 1  ;;  %1051 = vst.msk [vmem:[#allocation14] sm:$0x1] %vm1050_vm0, %v1042_v6 }
 0xcc8   :  { %v1049_v8 = vadd.f32 %v1048_v40, %v1047_v7 }
 0xcca   :  { %1052 = vst.msk [vmem:[#allocation14 + $0x1] sm:$0x1] %vm1050_vm0, %v1049_v8 }
 0xccb   :  { %1417 = shalt.err (!%p1414_p4)
}
 0xccc   :  { %s1418_s14 = scalar_lea.hbm %s1843_s12, 32 }
 0xccd   :  { %p1419_p5 = scmp.ne.s32.totalorder %s1843_s12, %s1418_s14  ;;  %p1422_p6 = scmp.lt.u32.totalorder %s1418_s14, %s1843_s12 }
 0xccf   :  { %p1424_p7 = pnand %p1422_p6, %p1419_p5 }
 0xcd1   :  { %1427 = shalt.err (!%p1424_p7)
}
 0xcd2   :  { %1064 = dma.vmem_to_hbm [thread:$0]  %s1059_s30, 32, %s1843_s12, [#allocation4], %s1446_s8, %s1446_s8, %s1447_s20  }
 0xcd3   :  { %1436 = dma.done.wait [#allocation4], 32  }
 0xcd4   :  { %1437 = vsyncadd [#allocation4], 4294967264 }
 0xcd5   :  { %1068 = vsyncpa [#allocation3], 1 }
 0xcd6   :  { %1069 = vsyncpa [#allocation6], 1 }
 0xcd7   :  { %1070 = vsyncpa [#allocation9], 1 }
 0xcd8   :  { %1071 = vsyncpa [#allocation12], 1 }
 0xcd9   :  { %1072 = vsyncpa [#allocation4], 1 }

</bundles_post_ra>
